<compile_context>
chip_gen: v7x
topology: tpu7x:2x2x1
jax: 0.10.0
libtpu: 0.0.40
codegen_flags: <defaults>
</compile_context>

<pallas_src>
import numpy as np
import jax
import jax.numpy as jnp
from jax import lax
from jax.experimental import pallas as pl
from jax.experimental.pallas import tpu as pltpu


def _sigmoid(x):
    # Exact identity; tanh runs on the EUP slot.
    return 0.5 * (jnp.tanh(0.5 * x) + 1.0)


def decoder_kernel(x_ref, oh_ref, wih_ref, whh_ref, b_ref,
                   w1_ref, w1c_ref, b1_ref, w2a_ref, w2c_ref, b2_ref,
                   out_ref, gx_ref, hall_ref):
    AB = x_ref.shape[0]
    H2 = whh_ref.shape[0]          # 2*Hp (att | comp fused) == 128 lanes
    A = oh_ref.shape[0]
    B = AB // A

    # --- 1. Hoisted input projection for BOTH LSTMs over ALL timesteps: one MXU matmul,
    #        parked in VMEM scratch so it is not a live value across the unrolled recurrence.
    x = x_ref[...].astype(jnp.bfloat16)                                          # (A*B, E)
    gx_ref[...] = jnp.dot(x, wih_ref[...],
                          preferred_element_type=jnp.float32) + b_ref[...]       # (A*B, 8Hp)

    # --- 2. Serial recurrence, fully unrolled (A is small). Both heads fused; with Hp=64
    #        every gate slice below is a whole 128-lane vreg (offsets 0/128/256/384).
    # TODO(synk): on v6e/v7x whh could be held stationary on the MXU across steps via
    #             pltpu.matmul_push_rhs / matmul_acc_lhs / matmul_pop; kept as jnp.dot.
    whh = whh_ref[...]                                                            # (2Hp, 8Hp)
    h = jnp.zeros((B, H2), jnp.float32)                                           # [h_att|h_comp]
    c = jnp.zeros((B, H2), jnp.float32)
    for t in range(A):
        g = gx_ref[t * B:(t + 1) * B, :] + jnp.dot(
            h.astype(jnp.bfloat16), whh, preferred_element_type=jnp.float32)      # (B, 8Hp)
        i = _sigmoid(g[:, 0 * H2:1 * H2])
        f = _sigmoid(g[:, 1 * H2:2 * H2])
        gg = jnp.tanh(g[:, 2 * H2:3 * H2])
        o = _sigmoid(g[:, 3 * H2:4 * H2])
        c = f * c + i * gg
        h = o * jnp.tanh(c)
        # Sublane-aligned (8,128) store bounds h's live range across the unrolled loop.
        hall_ref[t * B:(t + 1) * B, :] = h.astype(jnp.bfloat16)

    # --- 3. Both 2-layer MLP heads, batched over all timesteps.
    # cat([h, onehot]) @ W1 == h @ W1_h + onehot @ W1_c  (exactly equivalent split).
    oh_proj = jnp.dot(oh_ref[...].astype(jnp.bfloat16), w1c_ref[...],
                      preferred_element_type=jnp.float32)                         # (A, 2Hp)
    y1 = jnp.dot(hall_ref[...], w1_ref[...],
                 preferred_element_type=jnp.float32) + b1_ref[...]                # (A*B, 2Hp)
    y1 = y1.reshape(A, B, H2) + oh_proj.reshape(A, 1, H2)                         # (A, B, 2Hp)

    # Second layer ((H,1) weights): full-128-lane VPU multiply + lane reduction per head.
    # Padded lanes carry zero weights, so no sub-128 slicing is needed and the result is exact.
    att = jnp.sum(y1 * w2a_ref[...], axis=-1) + b2_ref[0]                         # (A, B)
    comp = jnp.sum(y1 * w2c_ref[...], axis=-1) + b2_ref[1]                        # (A, B)

    # --- 4. Softmax over B (torch dim=1) with an EXACT divide, weighted sum, sigmoid.
    m = jnp.max(att, axis=1, keepdims=True)
    p = jnp.exp(att - m)
    w = p / jnp.sum(p, axis=1, keepdims=True)
    score = jnp.sum(w * comp, axis=1, keepdims=True)                              # (A, 1)
    # Lane-dense store: broadcast across the 128-lane padded output row; sliced in wrapper.
    out_ref[...] = jnp.broadcast_to(_sigmoid(score), out_ref.shape)


def _fuse_params(p, H, Hp):
    """Fuse the attention/completion heads into 128-lane-aligned block weights (done once,
    outside the kernel). Each per-gate / per-head H-block is zero-padded to Hp so every
    in-kernel slice is whole-vreg. bf16 for MXU operands; biases and w2 stay f32."""
    bf16 = jnp.bfloat16
    f32 = jnp.float32
    padw = Hp - H

    def pad_gates(w):
        # (in, 4H) per-head LSTM weight/bias -> (in, 4Hp), each gate block zero-padded.
        return jnp.concatenate(
            [jnp.pad(w[:, k * H:(k + 1) * H], ((0, 0), (0, padw))) for k in range(4)], axis=1)

    def pad_rows(w):
        return jnp.pad(w, ((0, padw), (0, 0)))

    def pad_cols(w):
        return jnp.pad(w, ((0, 0), (0, padw)))

    def ileave(wa, wc):
        # PyTorch LSTM gate order [i, f, g, o]; per gate put [att(Hp) | comp(Hp)] side by side
        # so both heads share one 2Hp(=128)-lane gate tile.
        cols = []
        for k in range(4):
            cols.append(wa[:, k * Hp:(k + 1) * Hp])
            cols.append(wc[:, k * Hp:(k + 1) * Hp])
        return jnp.concatenate(cols, axis=1)

    zg = jnp.zeros((Hp, 4 * Hp), f32)
    zh = jnp.zeros((Hp, Hp), f32)

    wih = ileave(pad_gates(p["wih_att"]), pad_gates(p["wih_comp"]))               # (E, 8Hp)
    whh_att = pad_rows(pad_gates(p["whh_att"]))                                   # (Hp, 4Hp)
    whh_comp = pad_rows(pad_gates(p["whh_comp"]))
    whh = jnp.concatenate([ileave(whh_att, zg), ileave(zg, whh_comp)], axis=0)    # (2Hp, 8Hp)
    b = ileave(pad_gates(p["b_att"]), pad_gates(p["b_comp"]))                     # (1, 8Hp), pads=0

    w1h_att = pad_rows(pad_cols(p["w1h_att"]))                                    # (Hp, Hp)
    w1h_comp = pad_rows(pad_cols(p["w1h_comp"]))
    w1 = jnp.concatenate([jnp.concatenate([w1h_att, zh], axis=1),
                          jnp.concatenate([zh, w1h_comp], axis=1)], axis=0)       # (2Hp, 2Hp)
    w1c = jnp.concatenate([pad_cols(p["w1c_att"]), pad_cols(p["w1c_comp"])], 1)   # (C, 2Hp)
    b1 = jnp.concatenate([pad_cols(p["b1_att"]), pad_cols(p["b1_comp"])], 1)      # (1, 2Hp)

    w2a = jnp.concatenate([jnp.pad(p["w2_att"][:, 0], (0, padw)),
                           jnp.zeros((Hp,), f32)])[None, :]                       # (1, 2Hp)
    w2c = jnp.concatenate([jnp.zeros((Hp,), f32),
                           jnp.pad(p["w2_comp"][:, 0], (0, padw))])[None, :]      # (1, 2Hp)

    return dict(
        wih=wih.astype(bf16), whh=whh.astype(bf16), b=b,
        w1=w1.astype(bf16), w1c=w1c.astype(bf16), b1=b1,
        w2a=w2a, w2c=w2c,
        b2=jnp.concatenate([p["b2_att"][0], p["b2_comp"][0]]),                    # (2,)
    )


def baseline_plus_attention_classifier(seq_emb, onehot, params):
    A, B, E = seq_emb.shape
    C = onehot.shape[2]
    H = params["whh_att"].shape[0]
    Hp = max(64, ((H + 63) // 64) * 64)      # pad each head so fused state 2*Hp is 128-aligned
    H2p = 2 * Hp

    fused = _fuse_params(params, H, Hp)
    x2d = seq_emb.reshape(A * B, E)          # leading-dim merge only (layout plumbing)
    oh2d = onehot.reshape(A, C)

    vmem = pl.BlockSpec(memory_space=pltpu.MemorySpace.VMEM)
    smem = pl.BlockSpec(memory_space=pltpu.MemorySpace.SMEM)

    out = pl.pallas_call(
        decoder_kernel,
        out_shape=jax.ShapeDtypeStruct((A, 128), jnp.float32),   # lane-dense padded output
        in_specs=[vmem, vmem,                   # x, onehot
                  vmem, vmem, vmem,             # wih, whh, b
                  vmem, vmem, vmem,             # w1, w1c, b1
                  vmem, vmem,                   # w2 (att-padded), w2 (comp-padded)
                  smem],                        # b2 scalars
        out_specs=vmem,
        scratch_shapes=[
            pltpu.VMEM((A * B, 4 * H2p), jnp.float32),   # hoisted input-projection gates
            pltpu.VMEM((A * B, H2p), jnp.bfloat16),      # per-step h states (both heads)
        ],
        # Explicit (generous) limit; footprint is ~KiB so this is headroom even on v7x's 64 MiB.
        compiler_params=pltpu.CompilerParams(vmem_limit_bytes=32 * 1024 * 1024),
    )(x2d, oh2d, fused["wih"], fused["whh"], fused["b"],
      fused["w1"], fused["w1c"], fused["b1"], fused["w2a"], fused["w2c"], fused["b2"])
    return out[:, 0]                                                             # (A,) final_score


def init_params(key, E, H, C, scale=0.1):
    ks = jax.random.split(key, 16)

    def n(k, shape):
        return scale * jax.random.normal(k, shape, jnp.float32)

    # LSTM weights stored pre-transposed ((in, 4H)); bias = b_ih + b_hh combined.
    # MLP first linear ((H+C) -> H) stored split & transposed; second linear stored as (H, 1).
    return dict(
        wih_att=n(ks[0], (E, 4 * H)), whh_att=n(ks[1], (H, 4 * H)), b_att=n(ks[2], (1, 4 * H)),
        wih_comp=n(ks[3], (E, 4 * H)), whh_comp=n(ks[4], (H, 4 * H)), b_comp=n(ks[5], (1, 4 * H)),
        w1h_att=n(ks[6], (H, H)), w1c_att=n(ks[7], (C, H)), b1_att=n(ks[8], (1, H)),
        w2_att=n(ks[9], (H, 1)), b2_att=n(ks[10], (1, 1)),
        w1h_comp=n(ks[11], (H, H)), w1c_comp=n(ks[12], (C, H)), b1_comp=n(ks[13], (1, H)),
        w2_comp=n(ks[14], (H, 1)), b2_comp=n(ks[15], (1, 1)),
    )


def reference_forward(seq_emb, onehot, p):
    # Pure-JAX (f32) reference replicating the PyTorch forward semantics exactly.
    A, B, E = seq_emb.shape
    C = onehot.shape[2]
    H = p["whh_att"].shape[0]

    def lstm(x, wih, whh, b):
        def step(carry, x_t):
            h, c = carry
            g = x_t @ wih + h @ whh + b
            i = jax.nn.sigmoid(g[:, :H])
            f = jax.nn.sigmoid(g[:, H:2 * H])
            gg = jnp.tanh(g[:, 2 * H:3 * H])
            o = jax.nn.sigmoid(g[:, 3 * H:])
            c = f * c + i * gg
            h = o * jnp.tanh(c)
            return (h, c), h
        init = (jnp.zeros((B, H), jnp.float32), jnp.zeros((B, H), jnp.float32))
        _, hs = lax.scan(step, init, x)
        return hs                                                           # (A, B, H)

    hs_att = lstm(seq_emb, p["wih_att"], p["whh_att"], p["b_att"][0])
    hs_comp = lstm(seq_emb, p["wih_comp"], p["whh_comp"], p["b_comp"][0])
    oh_seq = jnp.broadcast_to(onehot, (A, B, C)).astype(jnp.float32)

    def mlp(hs, w1h, w1c, b1, w2, b2):
        inp = jnp.concatenate([hs, oh_seq], axis=2)                         # (A, B, H+C)
        w1 = jnp.concatenate([w1h, w1c], axis=0)                            # (H+C, H)
        y = inp @ w1 + b1[0]
        y = y @ w2 + b2[0]
        return y[..., 0]                                                    # (A, B)

    att = mlp(hs_att, p["w1h_att"], p["w1c_att"], p["b1_att"], p["w2_att"], p["b2_att"])
    comp = mlp(hs_comp, p["w1h_comp"], p["w1c_comp"], p["b1_comp"], p["w2_comp"], p["b2_comp"])
    att_sm = jax.nn.softmax(att, axis=1)
    return jax.nn.sigmoid(jnp.sum(att_sm * comp, axis=1))                   # (A,)


if __name__ == "__main__":
    # axis-0 "batch"/recurrence length, axis-1 "seq_len"/LSTM batch, embed, hidden, classes
    A, B, E, H, C = 8, 8, 32, 32, 4
    key = jax.random.PRNGKey(0)
    k_x, k_cls, k_p = jax.random.split(key, 3)

    seq_emb = jax.random.normal(k_x, (A, B, E), jnp.float32)
    classes = jax.random.randint(k_cls, (A,), 0, C)
    onehot = jax.nn.one_hot(classes, C, dtype=jnp.float32)[:, None, :]      # (A, 1, C)
    params = init_params(k_p, E, H, C)

    out = baseline_plus_attention_classifier(seq_emb, onehot, params)
    out = jax.block_until_ready(out)

    ref = reference_forward(seq_emb, onehot, params)
    np.testing.assert_allclose(np.asarray(out), np.asarray(ref), atol=1e-2, rtol=1e-2)
    print("KERNEL_OK")
</pallas_src>

<mosaic_0001>
module attributes {stable_mosaic.version = 11 : i64} {
  func.func @decoder_kernel(%arg0: memref<64x32xf32, #tpu.memory_space<vmem>>, %arg1: memref<8x4xf32, #tpu.memory_space<vmem>>, %arg2: memref<32x512xbf16, #tpu.memory_space<vmem>>, %arg3: memref<128x512xbf16, #tpu.memory_space<vmem>>, %arg4: memref<1x512xf32, #tpu.memory_space<vmem>>, %arg5: memref<128x128xbf16, #tpu.memory_space<vmem>>, %arg6: memref<4x128xbf16, #tpu.memory_space<vmem>>, %arg7: memref<1x128xf32, #tpu.memory_space<vmem>>, %arg8: memref<1x128xf32, #tpu.memory_space<vmem>>, %arg9: memref<1x128xf32, #tpu.memory_space<vmem>>, %arg10: memref<2xf32, #tpu.memory_space<smem>>, %arg11: memref<8x128xf32, #tpu.memory_space<vmem>>, %arg12: memref<64x512xf32, #tpu.memory_space<vmem>>, %arg13: memref<64x128xbf16, #tpu.memory_space<vmem>>) attributes {dimension_semantics = [], scalar_prefetch = 0 : i64, scratch_operands = 2 : i64, tpu.core_type = #tpu.core_type<tc>} {
    %c0 = arith.constant 0 : index
    %c0_0 = arith.constant 0 : index
    %0 = vector.load %arg0[%c0, %c0_0] : memref<64x32xf32, #tpu.memory_space<vmem>>, vector<64x32xf32>
    %1 = arith.truncf %0 : vector<64x32xf32> to vector<64x32xbf16>
    %c0_1 = arith.constant 0 : index
    %c0_2 = arith.constant 0 : index
    %2 = vector.load %arg2[%c0_1, %c0_2] : memref<32x512xbf16, #tpu.memory_space<vmem>>, vector<32x512xbf16>
    %cst = arith.constant dense<0.000000e+00> : vector<64x512xf32>
    %3 = tpu.matmul %1, %2, %cst {dimension_numbers = #tpu.dot_dimension_numbers<[1], [0], [0], [1], [0, 0, 1, 1], [], []>} : vector<64x32xbf16>, vector<32x512xbf16>, vector<64x512xf32> -> vector<64x512xf32>
    %c0_3 = arith.constant 0 : index
    %c0_4 = arith.constant 0 : index
    %4 = vector.load %arg4[%c0_3, %c0_4] : memref<1x512xf32, #tpu.memory_space<vmem>>, vector<1x512xf32>
    %5 = vector.broadcast %4 : vector<1x512xf32> to vector<64x512xf32>
    %6 = arith.addf %3, %5 : vector<64x512xf32>
    %c0_5 = arith.constant 0 : index
    %c0_6 = arith.constant 0 : index
    %7 = vector.load %arg12[%c0_5, %c0_6] : memref<64x512xf32, #tpu.memory_space<vmem>>, vector<64x512xf32>
    tpu.vector_store %arg12[%c0_5, %c0_6], %6 {strides = array<i32>} : memref<64x512xf32, #tpu.memory_space<vmem>>, vector<64x512xf32>,
    %c0_7 = arith.constant 0 : index
    %c0_8 = arith.constant 0 : index
    %8 = vector.load %arg3[%c0_7, %c0_8] : memref<128x512xbf16, #tpu.memory_space<vmem>>, vector<128x512xbf16>
    %cst_9 = arith.constant 0.000000e+00 : f32
    %9 = vector.broadcast %cst_9 : f32 to vector<8x128xf32>
    %cst_10 = arith.constant 0.000000e+00 : f32
    %10 = vector.broadcast %cst_10 : f32 to vector<8x128xf32>
    %c0_11 = arith.constant 0 : index
    %c0_12 = arith.constant 0 : index
    %11 = vector.load %arg12[%c0_11, %c0_12] : memref<64x512xf32, #tpu.memory_space<vmem>>, vector<8x512xf32>
    %12 = arith.truncf %9 : vector<8x128xf32> to vector<8x128xbf16>
    %cst_13 = arith.constant dense<0.000000e+00> : vector<8x512xf32>
    %13 = tpu.matmul %12, %8, %cst_13 {dimension_numbers = #tpu.dot_dimension_numbers<[1], [0], [0], [1], [0, 0, 1, 1], [], []>} : vector<8x128xbf16>, vector<128x512xbf16>, vector<8x512xf32> -> vector<8x512xf32>
    %14 = arith.addf %11, %13 : vector<8x512xf32>
    %15 = vector.extract_strided_slice %14 {offsets = [0, 0], sizes = [8, 128], strides = [1, 1]} : vector<8x512xf32> to vector<8x128xf32>
    %cst_14 = arith.constant 5.000000e-01 : f32
    %16 = vector.broadcast %cst_14 : f32 to vector<8x128xf32>
    %17 = arith.mulf %16, %15 : vector<8x128xf32>
    %18 = math.tanh %17 : vector<8x128xf32>
    %cst_15 = arith.constant 1.000000e+00 : f32
    %19 = vector.broadcast %cst_15 : f32 to vector<8x128xf32>
    %20 = arith.addf %18, %19 : vector<8x128xf32>
    %cst_16 = arith.constant 5.000000e-01 : f32
    %21 = vector.broadcast %cst_16 : f32 to vector<8x128xf32>
    %22 = arith.mulf %21, %20 : vector<8x128xf32>
    %23 = vector.extract_strided_slice %14 {offsets = [0, 128], sizes = [8, 128], strides = [1, 1]} : vector<8x512xf32> to vector<8x128xf32>
    %cst_17 = arith.constant 5.000000e-01 : f32
    %24 = vector.broadcast %cst_17 : f32 to vector<8x128xf32>
    %25 = arith.mulf %24, %23 : vector<8x128xf32>
    %26 = math.tanh %25 : vector<8x128xf32>
    %cst_18 = arith.constant 1.000000e+00 : f32
    %27 = vector.broadcast %cst_18 : f32 to vector<8x128xf32>
    %28 = arith.addf %26, %27 : vector<8x128xf32>
    %cst_19 = arith.constant 5.000000e-01 : f32
    %29 = vector.broadcast %cst_19 : f32 to vector<8x128xf32>
    %30 = arith.mulf %29, %28 : vector<8x128xf32>
    %31 = vector.extract_strided_slice %14 {offsets = [0, 256], sizes = [8, 128], strides = [1, 1]} : vector<8x512xf32> to vector<8x128xf32>
    %32 = math.tanh %31 : vector<8x128xf32>
    %33 = vector.extract_strided_slice %14 {offsets = [0, 384], sizes = [8, 128], strides = [1, 1]} : vector<8x512xf32> to vector<8x128xf32>
    %cst_20 = arith.constant 5.000000e-01 : f32
    %34 = vector.broadcast %cst_20 : f32 to vector<8x128xf32>
    %35 = arith.mulf %34, %33 : vector<8x128xf32>
    %36 = math.tanh %35 : vector<8x128xf32>
    %cst_21 = arith.constant 1.000000e+00 : f32
    %37 = vector.broadcast %cst_21 : f32 to vector<8x128xf32>
    %38 = arith.addf %36, %37 : vector<8x128xf32>
    %cst_22 = arith.constant 5.000000e-01 : f32
    %39 = vector.broadcast %cst_22 : f32 to vector<8x128xf32>
    %40 = arith.mulf %39, %38 : vector<8x128xf32>
    %41 = arith.mulf %30, %10 : vector<8x128xf32>
    %42 = arith.mulf %22, %32 : vector<8x128xf32>
    %43 = arith.addf %41, %42 : vector<8x128xf32>
    %44 = math.tanh %43 : vector<8x128xf32>
    %45 = arith.mulf %40, %44 : vector<8x128xf32>
    %46 = arith.truncf %45 : vector<8x128xf32> to vector<8x128xbf16>
    %c0_23 = arith.constant 0 : index
    %c0_24 = arith.constant 0 : index
    %47 = vector.load %arg13[%c0_23, %c0_24] : memref<64x128xbf16, #tpu.memory_space<vmem>>, vector<8x128xbf16>
    tpu.vector_store %arg13[%c0_23, %c0_24], %46 {strides = array<i32>} : memref<64x128xbf16, #tpu.memory_space<vmem>>, vector<8x128xbf16>,
    %c8 = arith.constant 8 : index
    %c0_25 = arith.constant 0 : index
    %48 = vector.load %arg12[%c8, %c0_25] : memref<64x512xf32, #tpu.memory_space<vmem>>, vector<8x512xf32>
    %49 = arith.truncf %45 : vector<8x128xf32> to vector<8x128xbf16>
    %cst_26 = arith.constant dense<0.000000e+00> : vector<8x512xf32>
    %50 = tpu.matmul %49, %8, %cst_26 {dimension_numbers = #tpu.dot_dimension_numbers<[1], [0], [0], [1], [0, 0, 1, 1], [], []>} : vector<8x128xbf16>, vector<128x512xbf16>, vector<8x512xf32> -> vector<8x512xf32>
    %51 = arith.addf %48, %50 : vector<8x512xf32>
    %52 = vector.extract_strided_slice %51 {offsets = [0, 0], sizes = [8, 128], strides = [1, 1]} : vector<8x512xf32> to vector<8x128xf32>
    %cst_27 = arith.constant 5.000000e-01 : f32
    %53 = vector.broadcast %cst_27 : f32 to vector<8x128xf32>
    %54 = arith.mulf %53, %52 : vector<8x128xf32>
    %55 = math.tanh %54 : vector<8x128xf32>
    %cst_28 = arith.constant 1.000000e+00 : f32
    %56 = vector.broadcast %cst_28 : f32 to vector<8x128xf32>
    %57 = arith.addf %55, %56 : vector<8x128xf32>
    %cst_29 = arith.constant 5.000000e-01 : f32
    %58 = vector.broadcast %cst_29 : f32 to vector<8x128xf32>
    %59 = arith.mulf %58, %57 : vector<8x128xf32>
    %60 = vector.extract_strided_slice %51 {offsets = [0, 128], sizes = [8, 128], strides = [1, 1]} : vector<8x512xf32> to vector<8x128xf32>
    %cst_30 = arith.constant 5.000000e-01 : f32
    %61 = vector.broadcast %cst_30 : f32 to vector<8x128xf32>
    %62 = arith.mulf %61, %60 : vector<8x128xf32>
    %63 = math.tanh %62 : vector<8x128xf32>
    %cst_31 = arith.constant 1.000000e+00 : f32
    %64 = vector.broadcast %cst_31 : f32 to vector<8x128xf32>
    %65 = arith.addf %63, %64 : vector<8x128xf32>
    %cst_32 = arith.constant 5.000000e-01 : f32
    %66 = vector.broadcast %cst_32 : f32 to vector<8x128xf32>
    %67 = arith.mulf %66, %65 : vector<8x128xf32>
    %68 = vector.extract_strided_slice %51 {offsets = [0, 256], sizes = [8, 128], strides = [1, 1]} : vector<8x512xf32> to vector<8x128xf32>
    %69 = math.tanh %68 : vector<8x128xf32>
    %70 = vector.extract_strided_slice %51 {offsets = [0, 384], sizes = [8, 128], strides = [1, 1]} : vector<8x512xf32> to vector<8x128xf32>
    %cst_33 = arith.constant 5.000000e-01 : f32
    %71 = vector.broadcast %cst_33 : f32 to vector<8x128xf32>
    %72 = arith.mulf %71, %70 : vector<8x128xf32>
    %73 = math.tanh %72 : vector<8x128xf32>
    %cst_34 = arith.constant 1.000000e+00 : f32
    %74 = vector.broadcast %cst_34 : f32 to vector<8x128xf32>
    %75 = arith.addf %73, %74 : vector<8x128xf32>
    %cst_35 = arith.constant 5.000000e-01 : f32
    %76 = vector.broadcast %cst_35 : f32 to vector<8x128xf32>
    %77 = arith.mulf %76, %75 : vector<8x128xf32>
    %78 = arith.mulf %67, %43 : vector<8x128xf32>
    %79 = arith.mulf %59, %69 : vector<8x128xf32>
    %80 = arith.addf %78, %79 : vector<8x128xf32>
    %81 = math.tanh %80 : vector<8x128xf32>
    %82 = arith.mulf %77, %81 : vector<8x128xf32>
    %83 = arith.truncf %82 : vector<8x128xf32> to vector<8x128xbf16>
    %c8_36 = arith.constant 8 : index
    %c0_37 = arith.constant 0 : index
    %84 = vector.load %arg13[%c8_36, %c0_37] : memref<64x128xbf16, #tpu.memory_space<vmem>>, vector<8x128xbf16>
    tpu.vector_store %arg13[%c8_36, %c0_37], %83 {strides = array<i32>} : memref<64x128xbf16, #tpu.memory_space<vmem>>, vector<8x128xbf16>,
    %c16 = arith.constant 16 : index
    %c0_38 = arith.constant 0 : index
    %85 = vector.load %arg12[%c16, %c0_38] : memref<64x512xf32, #tpu.memory_space<vmem>>, vector<8x512xf32>
    %86 = arith.truncf %82 : vector<8x128xf32> to vector<8x128xbf16>
    %cst_39 = arith.constant dense<0.000000e+00> : vector<8x512xf32>
    %87 = tpu.matmul %86, %8, %cst_39 {dimension_numbers = #tpu.dot_dimension_numbers<[1], [0], [0], [1], [0, 0, 1, 1], [], []>} : vector<8x128xbf16>, vector<128x512xbf16>, vector<8x512xf32> -> vector<8x512xf32>
    %88 = arith.addf %85, %87 : vector<8x512xf32>
    %89 = vector.extract_strided_slice %88 {offsets = [0, 0], sizes = [8, 128], strides = [1, 1]} : vector<8x512xf32> to vector<8x128xf32>
    %cst_40 = arith.constant 5.000000e-01 : f32
    %90 = vector.broadcast %cst_40 : f32 to vector<8x128xf32>
    %91 = arith.mulf %90, %89 : vector<8x128xf32>
    %92 = math.tanh %91 : vector<8x128xf32>
    %cst_41 = arith.constant 1.000000e+00 : f32
    %93 = vector.broadcast %cst_41 : f32 to vector<8x128xf32>
    %94 = arith.addf %92, %93 : vector<8x128xf32>
    %cst_42 = arith.constant 5.000000e-01 : f32
    %95 = vector.broadcast %cst_42 : f32 to vector<8x128xf32>
    %96 = arith.mulf %95, %94 : vector<8x128xf32>
    %97 = vector.extract_strided_slice %88 {offsets = [0, 128], sizes = [8, 128], strides = [1, 1]} : vector<8x512xf32> to vector<8x128xf32>
    %cst_43 = arith.constant 5.000000e-01 : f32
    %98 = vector.broadcast %cst_43 : f32 to vector<8x128xf32>
    %99 = arith.mulf %98, %97 : vector<8x128xf32>
    %100 = math.tanh %99 : vector<8x128xf32>
    %cst_44 = arith.constant 1.000000e+00 : f32
    %101 = vector.broadcast %cst_44 : f32 to vector<8x128xf32>
    %102 = arith.addf %100, %101 : vector<8x128xf32>
    %cst_45 = arith.constant 5.000000e-01 : f32
    %103 = vector.broadcast %cst_45 : f32 to vector<8x128xf32>
    %104 = arith.mulf %103, %102 : vector<8x128xf32>
    %105 = vector.extract_strided_slice %88 {offsets = [0, 256], sizes = [8, 128], strides = [1, 1]} : vector<8x512xf32> to vector<8x128xf32>
    %106 = math.tanh %105 : vector<8x128xf32>
    %107 = vector.extract_strided_slice %88 {offsets = [0, 384], sizes = [8, 128], strides = [1, 1]} : vector<8x512xf32> to vector<8x128xf32>
    %cst_46 = arith.constant 5.000000e-01 : f32
    %108 = vector.broadcast %cst_46 : f32 to vector<8x128xf32>
    %109 = arith.mulf %108, %107 : vector<8x128xf32>
    %110 = math.tanh %109 : vector<8x128xf32>
    %cst_47 = arith.constant 1.000000e+00 : f32
    %111 = vector.broadcast %cst_47 : f32 to vector<8x128xf32>
    %112 = arith.addf %110, %111 : vector<8x128xf32>
    %cst_48 = arith.constant 5.000000e-01 : f32
    %113 = vector.broadcast %cst_48 : f32 to vector<8x128xf32>
    %114 = arith.mulf %113, %112 : vector<8x128xf32>
    %115 = arith.mulf %104, %80 : vector<8x128xf32>
    %116 = arith.mulf %96, %106 : vector<8x128xf32>
    %117 = arith.addf %115, %116 : vector<8x128xf32>
    %118 = math.tanh %117 : vector<8x128xf32>
    %119 = arith.mulf %114, %118 : vector<8x128xf32>
    %120 = arith.truncf %119 : vector<8x128xf32> to vector<8x128xbf16>
    %c16_49 = arith.constant 16 : index
    %c0_50 = arith.constant 0 : index
    %121 = vector.load %arg13[%c16_49, %c0_50] : memref<64x128xbf16, #tpu.memory_space<vmem>>, vector<8x128xbf16>
    tpu.vector_store %arg13[%c16_49, %c0_50], %120 {strides = array<i32>} : memref<64x128xbf16, #tpu.memory_space<vmem>>, vector<8x128xbf16>,
    %c24 = arith.constant 24 : index
    %c0_51 = arith.constant 0 : index
    %122 = vector.load %arg12[%c24, %c0_51] : memref<64x512xf32, #tpu.memory_space<vmem>>, vector<8x512xf32>
    %123 = arith.truncf %119 : vector<8x128xf32> to vector<8x128xbf16>
    %cst_52 = arith.constant dense<0.000000e+00> : vector<8x512xf32>
    %124 = tpu.matmul %123, %8, %cst_52 {dimension_numbers = #tpu.dot_dimension_numbers<[1], [0], [0], [1], [0, 0, 1, 1], [], []>} : vector<8x128xbf16>, vector<128x512xbf16>, vector<8x512xf32> -> vector<8x512xf32>
    %125 = arith.addf %122, %124 : vector<8x512xf32>
    %126 = vector.extract_strided_slice %125 {offsets = [0, 0], sizes = [8, 128], strides = [1, 1]} : vector<8x512xf32> to vector<8x128xf32>
    %cst_53 = arith.constant 5.000000e-01 : f32
    %127 = vector.broadcast %cst_53 : f32 to vector<8x128xf32>
    %128 = arith.mulf %127, %126 : vector<8x128xf32>
    %129 = math.tanh %128 : vector<8x128xf32>
    %cst_54 = arith.constant 1.000000e+00 : f32
    %130 = vector.broadcast %cst_54 : f32 to vector<8x128xf32>
    %131 = arith.addf %129, %130 : vector<8x128xf32>
    %cst_55 = arith.constant 5.000000e-01 : f32
    %132 = vector.broadcast %cst_55 : f32 to vector<8x128xf32>
    %133 = arith.mulf %132, %131 : vector<8x128xf32>
    %134 = vector.extract_strided_slice %125 {offsets = [0, 128], sizes = [8, 128], strides = [1, 1]} : vector<8x512xf32> to vector<8x128xf32>
    %cst_56 = arith.constant 5.000000e-01 : f32
    %135 = vector.broadcast %cst_56 : f32 to vector<8x128xf32>
    %136 = arith.mulf %135, %134 : vector<8x128xf32>
    %137 = math.tanh %136 : vector<8x128xf32>
    %cst_57 = arith.constant 1.000000e+00 : f32
    %138 = vector.broadcast %cst_57 : f32 to vector<8x128xf32>
    %139 = arith.addf %137, %138 : vector<8x128xf32>
    %cst_58 = arith.constant 5.000000e-01 : f32
    %140 = vector.broadcast %cst_58 : f32 to vector<8x128xf32>
    %141 = arith.mulf %140, %139 : vector<8x128xf32>
    %142 = vector.extract_strided_slice %125 {offsets = [0, 256], sizes = [8, 128], strides = [1, 1]} : vector<8x512xf32> to vector<8x128xf32>
    %143 = math.tanh %142 : vector<8x128xf32>
    %144 = vector.extract_strided_slice %125 {offsets = [0, 384], sizes = [8, 128], strides = [1, 1]} : vector<8x512xf32> to vector<8x128xf32>
    %cst_59 = arith.constant 5.000000e-01 : f32
    %145 = vector.broadcast %cst_59 : f32 to vector<8x128xf32>
    %146 = arith.mulf %145, %144 : vector<8x128xf32>
    %147 = math.tanh %146 : vector<8x128xf32>
    %cst_60 = arith.constant 1.000000e+00 : f32
    %148 = vector.broadcast %cst_60 : f32 to vector<8x128xf32>
    %149 = arith.addf %147, %148 : vector<8x128xf32>
    %cst_61 = arith.constant 5.000000e-01 : f32
    %150 = vector.broadcast %cst_61 : f32 to vector<8x128xf32>
    %151 = arith.mulf %150, %149 : vector<8x128xf32>
    %152 = arith.mulf %141, %117 : vector<8x128xf32>
    %153 = arith.mulf %133, %143 : vector<8x128xf32>
    %154 = arith.addf %152, %153 : vector<8x128xf32>
    %155 = math.tanh %154 : vector<8x128xf32>
    %156 = arith.mulf %151, %155 : vector<8x128xf32>
    %157 = arith.truncf %156 : vector<8x128xf32> to vector<8x128xbf16>
    %c24_62 = arith.constant 24 : index
    %c0_63 = arith.constant 0 : index
    %158 = vector.load %arg13[%c24_62, %c0_63] : memref<64x128xbf16, #tpu.memory_space<vmem>>, vector<8x128xbf16>
    tpu.vector_store %arg13[%c24_62, %c0_63], %157 {strides = array<i32>} : memref<64x128xbf16, #tpu.memory_space<vmem>>, vector<8x128xbf16>,
    %c32 = arith.constant 32 : index
    %c0_64 = arith.constant 0 : index
    %159 = vector.load %arg12[%c32, %c0_64] : memref<64x512xf32, #tpu.memory_space<vmem>>, vector<8x512xf32>
    %160 = arith.truncf %156 : vector<8x128xf32> to vector<8x128xbf16>
    %cst_65 = arith.constant dense<0.000000e+00> : vector<8x512xf32>
    %161 = tpu.matmul %160, %8, %cst_65 {dimension_numbers = #tpu.dot_dimension_numbers<[1], [0], [0], [1], [0, 0, 1, 1], [], []>} : vector<8x128xbf16>, vector<128x512xbf16>, vector<8x512xf32> -> vector<8x512xf32>
    %162 = arith.addf %159, %161 : vector<8x512xf32>
    %163 = vector.extract_strided_slice %162 {offsets = [0, 0], sizes = [8, 128], strides = [1, 1]} : vector<8x512xf32> to vector<8x128xf32>
    %cst_66 = arith.constant 5.000000e-01 : f32
    %164 = vector.broadcast %cst_66 : f32 to vector<8x128xf32>
    %165 = arith.mulf %164, %163 : vector<8x128xf32>
    %166 = math.tanh %165 : vector<8x128xf32>
    %cst_67 = arith.constant 1.000000e+00 : f32
    %167 = vector.broadcast %cst_67 : f32 to vector<8x128xf32>
    %168 = arith.addf %166, %167 : vector<8x128xf32>
    %cst_68 = arith.constant 5.000000e-01 : f32
    %169 = vector.broadcast %cst_68 : f32 to vector<8x128xf32>
    %170 = arith.mulf %169, %168 : vector<8x128xf32>
    %171 = vector.extract_strided_slice %162 {offsets = [0, 128], sizes = [8, 128], strides = [1, 1]} : vector<8x512xf32> to vector<8x128xf32>
    %cst_69 = arith.constant 5.000000e-01 : f32
    %172 = vector.broadcast %cst_69 : f32 to vector<8x128xf32>
    %173 = arith.mulf %172, %171 : vector<8x128xf32>
    %174 = math.tanh %173 : vector<8x128xf32>
    %cst_70 = arith.constant 1.000000e+00 : f32
    %175 = vector.broadcast %cst_70 : f32 to vector<8x128xf32>
    %176 = arith.addf %174, %175 : vector<8x128xf32>
    %cst_71 = arith.constant 5.000000e-01 : f32
    %177 = vector.broadcast %cst_71 : f32 to vector<8x128xf32>
    %178 = arith.mulf %177, %176 : vector<8x128xf32>
    %179 = vector.extract_strided_slice %162 {offsets = [0, 256], sizes = [8, 128], strides = [1, 1]} : vector<8x512xf32> to vector<8x128xf32>
    %180 = math.tanh %179 : vector<8x128xf32>
    %181 = vector.extract_strided_slice %162 {offsets = [0, 384], sizes = [8, 128], strides = [1, 1]} : vector<8x512xf32> to vector<8x128xf32>
    %cst_72 = arith.constant 5.000000e-01 : f32
    %182 = vector.broadcast %cst_72 : f32 to vector<8x128xf32>
    %183 = arith.mulf %182, %181 : vector<8x128xf32>
    %184 = math.tanh %183 : vector<8x128xf32>
    %cst_73 = arith.constant 1.000000e+00 : f32
    %185 = vector.broadcast %cst_73 : f32 to vector<8x128xf32>
    %186 = arith.addf %184, %185 : vector<8x128xf32>
    %cst_74 = arith.constant 5.000000e-01 : f32
    %187 = vector.broadcast %cst_74 : f32 to vector<8x128xf32>
    %188 = arith.mulf %187, %186 : vector<8x128xf32>
    %189 = arith.mulf %178, %154 : vector<8x128xf32>
    %190 = arith.mulf %170, %180 : vector<8x128xf32>
    %191 = arith.addf %189, %190 : vector<8x128xf32>
    %192 = math.tanh %191 : vector<8x128xf32>
    %193 = arith.mulf %188, %192 : vector<8x128xf32>
    %194 = arith.truncf %193 : vector<8x128xf32> to vector<8x128xbf16>
    %c32_75 = arith.constant 32 : index
    %c0_76 = arith.constant 0 : index
    %195 = vector.load %arg13[%c32_75, %c0_76] : memref<64x128xbf16, #tpu.memory_space<vmem>>, vector<8x128xbf16>
    tpu.vector_store %arg13[%c32_75, %c0_76], %194 {strides = array<i32>} : memref<64x128xbf16, #tpu.memory_space<vmem>>, vector<8x128xbf16>,
    %c40 = arith.constant 40 : index
    %c0_77 = arith.constant 0 : index
    %196 = vector.load %arg12[%c40, %c0_77] : memref<64x512xf32, #tpu.memory_space<vmem>>, vector<8x512xf32>
    %197 = arith.truncf %193 : vector<8x128xf32> to vector<8x128xbf16>
    %cst_78 = arith.constant dense<0.000000e+00> : vector<8x512xf32>
    %198 = tpu.matmul %197, %8, %cst_78 {dimension_numbers = #tpu.dot_dimension_numbers<[1], [0], [0], [1], [0, 0, 1, 1], [], []>} : vector<8x128xbf16>, vector<128x512xbf16>, vector<8x512xf32> -> vector<8x512xf32>
    %199 = arith.addf %196, %198 : vector<8x512xf32>
    %200 = vector.extract_strided_slice %199 {offsets = [0, 0], sizes = [8, 128], strides = [1, 1]} : vector<8x512xf32> to vector<8x128xf32>
    %cst_79 = arith.constant 5.000000e-01 : f32
    %201 = vector.broadcast %cst_79 : f32 to vector<8x128xf32>
    %202 = arith.mulf %201, %200 : vector<8x128xf32>
    %203 = math.tanh %202 : vector<8x128xf32>
    %cst_80 = arith.constant 1.000000e+00 : f32
    %204 = vector.broadcast %cst_80 : f32 to vector<8x128xf32>
    %205 = arith.addf %203, %204 : vector<8x128xf32>
    %cst_81 = arith.constant 5.000000e-01 : f32
    %206 = vector.broadcast %cst_81 : f32 to vector<8x128xf32>
    %207 = arith.mulf %206, %205 : vector<8x128xf32>
    %208 = vector.extract_strided_slice %199 {offsets = [0, 128], sizes = [8, 128], strides = [1, 1]} : vector<8x512xf32> to vector<8x128xf32>
    %cst_82 = arith.constant 5.000000e-01 : f32
    %209 = vector.broadcast %cst_82 : f32 to vector<8x128xf32>
    %210 = arith.mulf %209, %208 : vector<8x128xf32>
    %211 = math.tanh %210 : vector<8x128xf32>
    %cst_83 = arith.constant 1.000000e+00 : f32
    %212 = vector.broadcast %cst_83 : f32 to vector<8x128xf32>
    %213 = arith.addf %211, %212 : vector<8x128xf32>
    %cst_84 = arith.constant 5.000000e-01 : f32
    %214 = vector.broadcast %cst_84 : f32 to vector<8x128xf32>
    %215 = arith.mulf %214, %213 : vector<8x128xf32>
    %216 = vector.extract_strided_slice %199 {offsets = [0, 256], sizes = [8, 128], strides = [1, 1]} : vector<8x512xf32> to vector<8x128xf32>
    %217 = math.tanh %216 : vector<8x128xf32>
    %218 = vector.extract_strided_slice %199 {offsets = [0, 384], sizes = [8, 128], strides = [1, 1]} : vector<8x512xf32> to vector<8x128xf32>
    %cst_85 = arith.constant 5.000000e-01 : f32
    %219 = vector.broadcast %cst_85 : f32 to vector<8x128xf32>
    %220 = arith.mulf %219, %218 : vector<8x128xf32>
    %221 = math.tanh %220 : vector<8x128xf32>
    %cst_86 = arith.constant 1.000000e+00 : f32
    %222 = vector.broadcast %cst_86 : f32 to vector<8x128xf32>
    %223 = arith.addf %221, %222 : vector<8x128xf32>
    %cst_87 = arith.constant 5.000000e-01 : f32
    %224 = vector.broadcast %cst_87 : f32 to vector<8x128xf32>
    %225 = arith.mulf %224, %223 : vector<8x128xf32>
    %226 = arith.mulf %215, %191 : vector<8x128xf32>
    %227 = arith.mulf %207, %217 : vector<8x128xf32>
    %228 = arith.addf %226, %227 : vector<8x128xf32>
    %229 = math.tanh %228 : vector<8x128xf32>
    %230 = arith.mulf %225, %229 : vector<8x128xf32>
    %231 = arith.truncf %230 : vector<8x128xf32> to vector<8x128xbf16>
    %c40_88 = arith.constant 40 : index
    %c0_89 = arith.constant 0 : index
    %232 = vector.load %arg13[%c40_88, %c0_89] : memref<64x128xbf16, #tpu.memory_space<vmem>>, vector<8x128xbf16>
    tpu.vector_store %arg13[%c40_88, %c0_89], %231 {strides = array<i32>} : memref<64x128xbf16, #tpu.memory_space<vmem>>, vector<8x128xbf16>,
    %c48 = arith.constant 48 : index
    %c0_90 = arith.constant 0 : index
    %233 = vector.load %arg12[%c48, %c0_90] : memref<64x512xf32, #tpu.memory_space<vmem>>, vector<8x512xf32>
    %234 = arith.truncf %230 : vector<8x128xf32> to vector<8x128xbf16>
    %cst_91 = arith.constant dense<0.000000e+00> : vector<8x512xf32>
    %235 = tpu.matmul %234, %8, %cst_91 {dimension_numbers = #tpu.dot_dimension_numbers<[1], [0], [0], [1], [0, 0, 1, 1], [], []>} : vector<8x128xbf16>, vector<128x512xbf16>, vector<8x512xf32> -> vector<8x512xf32>
    %236 = arith.addf %233, %235 : vector<8x512xf32>
    %237 = vector.extract_strided_slice %236 {offsets = [0, 0], sizes = [8, 128], strides = [1, 1]} : vector<8x512xf32> to vector<8x128xf32>
    %cst_92 = arith.constant 5.000000e-01 : f32
    %238 = vector.broadcast %cst_92 : f32 to vector<8x128xf32>
    %239 = arith.mulf %238, %237 : vector<8x128xf32>
    %240 = math.tanh %239 : vector<8x128xf32>
    %cst_93 = arith.constant 1.000000e+00 : f32
    %241 = vector.broadcast %cst_93 : f32 to vector<8x128xf32>
    %242 = arith.addf %240, %241 : vector<8x128xf32>
    %cst_94 = arith.constant 5.000000e-01 : f32
    %243 = vector.broadcast %cst_94 : f32 to vector<8x128xf32>
    %244 = arith.mulf %243, %242 : vector<8x128xf32>
    %245 = vector.extract_strided_slice %236 {offsets = [0, 128], sizes = [8, 128], strides = [1, 1]} : vector<8x512xf32> to vector<8x128xf32>
    %cst_95 = arith.constant 5.000000e-01 : f32
    %246 = vector.broadcast %cst_95 : f32 to vector<8x128xf32>
    %247 = arith.mulf %246, %245 : vector<8x128xf32>
    %248 = math.tanh %247 : vector<8x128xf32>
    %cst_96 = arith.constant 1.000000e+00 : f32
    %249 = vector.broadcast %cst_96 : f32 to vector<8x128xf32>
    %250 = arith.addf %248, %249 : vector<8x128xf32>
    %cst_97 = arith.constant 5.000000e-01 : f32
    %251 = vector.broadcast %cst_97 : f32 to vector<8x128xf32>
    %252 = arith.mulf %251, %250 : vector<8x128xf32>
    %253 = vector.extract_strided_slice %236 {offsets = [0, 256], sizes = [8, 128], strides = [1, 1]} : vector<8x512xf32> to vector<8x128xf32>
    %254 = math.tanh %253 : vector<8x128xf32>
    %255 = vector.extract_strided_slice %236 {offsets = [0, 384], sizes = [8, 128], strides = [1, 1]} : vector<8x512xf32> to vector<8x128xf32>
    %cst_98 = arith.constant 5.000000e-01 : f32
    %256 = vector.broadcast %cst_98 : f32 to vector<8x128xf32>
    %257 = arith.mulf %256, %255 : vector<8x128xf32>
    %258 = math.tanh %257 : vector<8x128xf32>
    %cst_99 = arith.constant 1.000000e+00 : f32
    %259 = vector.broadcast %cst_99 : f32 to vector<8x128xf32>
    %260 = arith.addf %258, %259 : vector<8x128xf32>
    %cst_100 = arith.constant 5.000000e-01 : f32
    %261 = vector.broadcast %cst_100 : f32 to vector<8x128xf32>
    %262 = arith.mulf %261, %260 : vector<8x128xf32>
    %263 = arith.mulf %252, %228 : vector<8x128xf32>
    %264 = arith.mulf %244, %254 : vector<8x128xf32>
    %265 = arith.addf %263, %264 : vector<8x128xf32>
    %266 = math.tanh %265 : vector<8x128xf32>
    %267 = arith.mulf %262, %266 : vector<8x128xf32>
    %268 = arith.truncf %267 : vector<8x128xf32> to vector<8x128xbf16>
    %c48_101 = arith.constant 48 : index
    %c0_102 = arith.constant 0 : index
    %269 = vector.load %arg13[%c48_101, %c0_102] : memref<64x128xbf16, #tpu.memory_space<vmem>>, vector<8x128xbf16>
    tpu.vector_store %arg13[%c48_101, %c0_102], %268 {strides = array<i32>} : memref<64x128xbf16, #tpu.memory_space<vmem>>, vector<8x128xbf16>,
    %c56 = arith.constant 56 : index
    %c0_103 = arith.constant 0 : index
    %270 = vector.load %arg12[%c56, %c0_103] : memref<64x512xf32, #tpu.memory_space<vmem>>, vector<8x512xf32>
    %271 = arith.truncf %267 : vector<8x128xf32> to vector<8x128xbf16>
    %cst_104 = arith.constant dense<0.000000e+00> : vector<8x512xf32>
    %272 = tpu.matmul %271, %8, %cst_104 {dimension_numbers = #tpu.dot_dimension_numbers<[1], [0], [0], [1], [0, 0, 1, 1], [], []>} : vector<8x128xbf16>, vector<128x512xbf16>, vector<8x512xf32> -> vector<8x512xf32>
    %273 = arith.addf %270, %272 : vector<8x512xf32>
    %274 = vector.extract_strided_slice %273 {offsets = [0, 0], sizes = [8, 128], strides = [1, 1]} : vector<8x512xf32> to vector<8x128xf32>
    %cst_105 = arith.constant 5.000000e-01 : f32
    %275 = vector.broadcast %cst_105 : f32 to vector<8x128xf32>
    %276 = arith.mulf %275, %274 : vector<8x128xf32>
    %277 = math.tanh %276 : vector<8x128xf32>
    %cst_106 = arith.constant 1.000000e+00 : f32
    %278 = vector.broadcast %cst_106 : f32 to vector<8x128xf32>
    %279 = arith.addf %277, %278 : vector<8x128xf32>
    %cst_107 = arith.constant 5.000000e-01 : f32
    %280 = vector.broadcast %cst_107 : f32 to vector<8x128xf32>
    %281 = arith.mulf %280, %279 : vector<8x128xf32>
    %282 = vector.extract_strided_slice %273 {offsets = [0, 128], sizes = [8, 128], strides = [1, 1]} : vector<8x512xf32> to vector<8x128xf32>
    %cst_108 = arith.constant 5.000000e-01 : f32
    %283 = vector.broadcast %cst_108 : f32 to vector<8x128xf32>
    %284 = arith.mulf %283, %282 : vector<8x128xf32>
    %285 = math.tanh %284 : vector<8x128xf32>
    %cst_109 = arith.constant 1.000000e+00 : f32
    %286 = vector.broadcast %cst_109 : f32 to vector<8x128xf32>
    %287 = arith.addf %285, %286 : vector<8x128xf32>
    %cst_110 = arith.constant 5.000000e-01 : f32
    %288 = vector.broadcast %cst_110 : f32 to vector<8x128xf32>
    %289 = arith.mulf %288, %287 : vector<8x128xf32>
    %290 = vector.extract_strided_slice %273 {offsets = [0, 256], sizes = [8, 128], strides = [1, 1]} : vector<8x512xf32> to vector<8x128xf32>
    %291 = math.tanh %290 : vector<8x128xf32>
    %292 = vector.extract_strided_slice %273 {offsets = [0, 384], sizes = [8, 128], strides = [1, 1]} : vector<8x512xf32> to vector<8x128xf32>
    %cst_111 = arith.constant 5.000000e-01 : f32
    %293 = vector.broadcast %cst_111 : f32 to vector<8x128xf32>
    %294 = arith.mulf %293, %292 : vector<8x128xf32>
    %295 = math.tanh %294 : vector<8x128xf32>
    %cst_112 = arith.constant 1.000000e+00 : f32
    %296 = vector.broadcast %cst_112 : f32 to vector<8x128xf32>
    %297 = arith.addf %295, %296 : vector<8x128xf32>
    %cst_113 = arith.constant 5.000000e-01 : f32
    %298 = vector.broadcast %cst_113 : f32 to vector<8x128xf32>
    %299 = arith.mulf %298, %297 : vector<8x128xf32>
    %300 = arith.mulf %289, %265 : vector<8x128xf32>
    %301 = arith.mulf %281, %291 : vector<8x128xf32>
    %302 = arith.addf %300, %301 : vector<8x128xf32>
    %303 = math.tanh %302 : vector<8x128xf32>
    %304 = arith.mulf %299, %303 : vector<8x128xf32>
    %305 = arith.truncf %304 : vector<8x128xf32> to vector<8x128xbf16>
    %c56_114 = arith.constant 56 : index
    %c0_115 = arith.constant 0 : index
    %306 = vector.load %arg13[%c56_114, %c0_115] : memref<64x128xbf16, #tpu.memory_space<vmem>>, vector<8x128xbf16>
    tpu.vector_store %arg13[%c56_114, %c0_115], %305 {strides = array<i32>} : memref<64x128xbf16, #tpu.memory_space<vmem>>, vector<8x128xbf16>,
    %c0_116 = arith.constant 0 : index
    %c0_117 = arith.constant 0 : index
    %307 = vector.load %arg1[%c0_116, %c0_117] : memref<8x4xf32, #tpu.memory_space<vmem>>, vector<8x4xf32>
    %308 = arith.truncf %307 : vector<8x4xf32> to vector<8x4xbf16>
    %c0_118 = arith.constant 0 : index
    %c0_119 = arith.constant 0 : index
    %309 = vector.load %arg6[%c0_118, %c0_119] : memref<4x128xbf16, #tpu.memory_space<vmem>>, vector<4x128xbf16>
    %cst_120 = arith.constant dense<0.000000e+00> : vector<8x128xf32>
    %310 = tpu.matmul %308, %309, %cst_120 {dimension_numbers = #tpu.dot_dimension_numbers<[1], [0], [0], [1], [0, 0, 1, 1], [], []>} : vector<8x4xbf16>, vector<4x128xbf16>, vector<8x128xf32> -> vector<8x128xf32>
    %c0_121 = arith.constant 0 : index
    %c0_122 = arith.constant 0 : index
    %311 = vector.load %arg13[%c0_121, %c0_122] : memref<64x128xbf16, #tpu.memory_space<vmem>>, vector<64x128xbf16>
    %c0_123 = arith.constant 0 : index
    %c0_124 = arith.constant 0 : index
    %312 = vector.load %arg5[%c0_123, %c0_124] : memref<128x128xbf16, #tpu.memory_space<vmem>>, vector<128x128xbf16>
    %cst_125 = arith.constant dense<0.000000e+00> : vector<64x128xf32>
    %313 = tpu.matmul %311, %312, %cst_125 {dimension_numbers = #tpu.dot_dimension_numbers<[1], [0], [0], [1], [0, 0, 1, 1], [], []>} : vector<64x128xbf16>, vector<128x128xbf16>, vector<64x128xf32> -> vector<64x128xf32>
    %c0_126 = arith.constant 0 : index
    %c0_127 = arith.constant 0 : index
    %314 = vector.load %arg7[%c0_126, %c0_127] : memref<1x128xf32, #tpu.memory_space<vmem>>, vector<1x128xf32>
    %315 = vector.broadcast %314 : vector<1x128xf32> to vector<64x128xf32>
    %316 = arith.addf %313, %315 : vector<64x128xf32>
    %317 = vector.shape_cast %316 : vector<64x128xf32> to vector<8x8x128xf32>
    %318 = vector.shape_cast %310 : vector<8x128xf32> to vector<8x1x128xf32>
    %319 = vector.broadcast %318 : vector<8x1x128xf32> to vector<8x8x128xf32>
    %320 = arith.addf %317, %319 : vector<8x8x128xf32>
    %c0_128 = arith.constant 0 : index
    %c0_129 = arith.constant 0 : index
    %321 = vector.load %arg8[%c0_128, %c0_129] : memref<1x128xf32, #tpu.memory_space<vmem>>, vector<1x128xf32>
    %322 = vector.shape_cast %321 : vector<1x128xf32> to vector<1x1x128xf32>
    %323 = vector.broadcast %322 : vector<1x1x128xf32> to vector<8x8x128xf32>
    %324 = arith.mulf %320, %323 : vector<8x8x128xf32>
    %cst_130 = arith.constant dense<0.000000e+00> : vector<8x8xf32>
    %325 = vector.multi_reduction <add>, %324, %cst_130 [2] : vector<8x8x128xf32> to vector<8x8xf32>
    %c0_131 = arith.constant 0 : index
    %326 = memref.load %arg10[%c0_131] : memref<2xf32, #tpu.memory_space<smem>>
    %327 = vector.broadcast %326 : f32 to vector<8x8xf32>
    %328 = arith.addf %325, %327 : vector<8x8xf32>
    %c0_132 = arith.constant 0 : index
    %c0_133 = arith.constant 0 : index
    %329 = vector.load %arg9[%c0_132, %c0_133] : memref<1x128xf32, #tpu.memory_space<vmem>>, vector<1x128xf32>
    %330 = vector.shape_cast %329 : vector<1x128xf32> to vector<1x1x128xf32>
    %331 = vector.broadcast %330 : vector<1x1x128xf32> to vector<8x8x128xf32>
    %332 = arith.mulf %320, %331 : vector<8x8x128xf32>
    %cst_134 = arith.constant dense<0.000000e+00> : vector<8x8xf32>
    %333 = vector.multi_reduction <add>, %332, %cst_134 [2] : vector<8x8x128xf32> to vector<8x8xf32>
    %c1 = arith.constant 1 : index
    %334 = memref.load %arg10[%c1] : memref<2xf32, #tpu.memory_space<smem>>
    %335 = vector.broadcast %334 : f32 to vector<8x8xf32>
    %336 = arith.addf %333, %335 : vector<8x8xf32>
    %cst_135 = arith.constant dense<0xFF800000> : vector<8xf32>
    %337 = vector.multi_reduction <maximumf>, %328, %cst_135 [1] : vector<8x8xf32> to vector<8xf32>
    %338 = vector.shape_cast %337 : vector<8xf32> to vector<8x1xf32>
    %339 = vector.broadcast %338 : vector<8x1xf32> to vector<8x8xf32>
    %340 = arith.subf %328, %339 : vector<8x8xf32>
    %341 = math.exp %340 : vector<8x8xf32>
    %cst_136 = arith.constant dense<0.000000e+00> : vector<8xf32>
    %342 = vector.multi_reduction <add>, %341, %cst_136 [1] : vector<8x8xf32> to vector<8xf32>
    %343 = vector.shape_cast %342 : vector<8xf32> to vector<8x1xf32>
    %344 = vector.broadcast %343 : vector<8x1xf32> to vector<8x8xf32>
    %345 = arith.divf %341, %344 : vector<8x8xf32>
    %346 = arith.mulf %345, %336 : vector<8x8xf32>
    %cst_137 = arith.constant dense<0.000000e+00> : vector<8xf32>
    %347 = vector.multi_reduction <add>, %346, %cst_137 [1] : vector<8x8xf32> to vector<8xf32>
    %348 = vector.shape_cast %347 : vector<8xf32> to vector<8x1xf32>
    %cst_138 = arith.constant 5.000000e-01 : f32
    %349 = vector.broadcast %cst_138 : f32 to vector<8x1xf32>
    %350 = arith.mulf %349, %348 : vector<8x1xf32>
    %351 = math.tanh %350 : vector<8x1xf32>
    %cst_139 = arith.constant 1.000000e+00 : f32
    %352 = vector.broadcast %cst_139 : f32 to vector<8x1xf32>
    %353 = arith.addf %351, %352 : vector<8x1xf32>
    %cst_140 = arith.constant 5.000000e-01 : f32
    %354 = vector.broadcast %cst_140 : f32 to vector<8x1xf32>
    %355 = arith.mulf %354, %353 : vector<8x1xf32>
    %356 = vector.shape_cast %355 : vector<8x1xf32> to vector<8x1xf32>
    %357 = vector.broadcast %356 : vector<8x1xf32> to vector<8x128xf32>
    %c0_141 = arith.constant 0 : index
    %c0_142 = arith.constant 0 : index
    %358 = vector.load %arg11[%c0_141, %c0_142] : memref<8x128xf32, #tpu.memory_space<vmem>>, vector<8x128xf32>
    tpu.vector_store %arg11[%c0_141, %c0_142], %357 {strides = array<i32>} : memref<8x128xf32, #tpu.memory_space<vmem>>, vector<8x128xf32>,
    return
  }
}

</mosaic_0001>

<bundles_post_ra>
// kernel: tpu_custom_call.1
= control target key start
LH: loop header
LB: loop body
LE: loop exit
PB: predicated region body
PF: predicated region fallthrough
CT: control target
= control target key end

     0   :  { %16 = vsyncpa [#allocation5], 0  ;;  %s3484_s0 = inlined_call_operand.vmem [shape: f32[64,32], index: 0, kind: input, shape index: {}]   ;;  %s3485_s1 = inlined_call_operand.vmem [shape: f32[8,4], index: 1, kind: input, shape index: {}]   ;;  %s3486_s2 = inlined_call_operand.vmem [shape: bf16[32,512], index: 2, kind: input, shape index: {}]   ;;  %s3487_s3 = inlined_call_operand.hbm [shape: bf16[128,512], index: 3, kind: input, shape index: {}]   ;;  %s3488_s4 = inlined_call_operand.vmem [shape: f32[1,512], index: 4, kind: input, shape index: {}]   ;;  %s3489_s5 = inlined_call_operand.hbm [shape: bf16[128,128], index: 5, kind: input, shape index: {}]   ;;  %s3490_s6 = inlined_call_operand.vmem [shape: bf16[4,128], index: 6, kind: input, shape index: {}]   ;;  %s3491_s7 = inlined_call_operand.vmem [shape: f32[1,128], index: 7, kind: input, shape index: {}]   ;;  %s3492_s8 = inlined_call_operand.vmem [shape: f32[1,128], index: 8, kind: input, shape index: {}]   ;;  %s3493_s9 = inlined_call_operand.vmem [shape: f32[1,128], index: 9, kind: input, shape index: {}]   ;;  %s3494_s10 = inlined_call_operand.vmem [shape: f32[2], index: 10, kind: input, shape index: {}]   ;;  %s3495_s11 = inlined_call_operand.hbm [shape: f32[8,128], index: 11, kind: output, shape index: {}]  }
   0x1   :  { %17 = vsyncpa [#allocation9], 0 }
   0x2   :  { %18 = vsyncpa [#allocation7], 0 }
   0x3   :  { %19 = vsyncpa [#allocation6], 0  ;;  %s2591_s17 = smov [#allocation4]   ;;  %s2505_s21 = scalar_lea.hbm %s3487_s3, 4096 }
   0x4   :  { %s31_s18 = sshll.u32 %s2591_s17, 4  ;;  %p2506_p0 = scmp.ne.s32.totalorder %s3487_s3, %s2505_s21  ;;  %s32_s18 = int_to_ptr.vmem [resolvable:$true] %s31_s18 }
   0x5   :  { %p2509_p1 = scmp.lt.u32.totalorder %s2505_s21, %s3487_s3 }
   0x7   :  { %p2511_p2 = pnand %p2509_p1, %p2506_p0 }
   0x9   :  { %2514 = shalt.err (!%p2511_p2)
}
   0xa   :  { %s2515_s26 = scalar_lea.vmem %s32_s18, 4096  ;;  %p2520_p4 = scmp.lt.s32.totalorder %s32_s18, %s32_s18 }
   0xb   :  { %p2516_p3 = scmp.ne.s32.totalorder %s32_s18, %s2515_s26  ;;  %p2521_p5 = scmp.lt.s32.totalorder %s2515_s26, %s2515_s26 }
   0xd   :  { %p2522_p6 = por %p2521_p5, %p2520_p4 }
   0xf   :  { %p2523_p7 = pnand %p2522_p6, %p2516_p3 }
  0x11   :  { %2526 = shalt.err (!%p2523_p7)
}
  0x12   :  { %s2592_s27 = smov 256   ;;  %s2593_s28 = smov 16  }
  0x13   :  { %37 = dma.hbm_to_vmem [thread:$0]  %s3487_s3, 4096, %s32_s18, [#allocation5], %s2592_s27, %s2592_s27, %s2593_s28  }
  0x14   :  { %s2594_s12 = smov [#allocation8]   ;;  %s2527_s16 = scalar_lea.hbm %s3489_s5, 1024 }
  0x15   :  { %s45_s13 = sshll.u32 %s2594_s12, 4  ;;  %p2528_p8 = scmp.ne.s32.totalorder %s3489_s5, %s2527_s16  ;;  %s46_s13 = int_to_ptr.vmem [resolvable:$true] %s45_s13 }
  0x16   :  { %p2531_p9 = scmp.lt.u32.totalorder %s2527_s16, %s3489_s5 }
  0x18   :  { %p2533_p10 = pnand %p2531_p9, %p2528_p8 }
  0x1a   :  { %2536 = shalt.err (!%p2533_p10)
}
  0x1b   :  { %s2537_s22 = scalar_lea.vmem %s46_s13, 1024  ;;  %p2542_p12 = scmp.lt.s32.totalorder %s46_s13, %s46_s13 }
  0x1c   :  { %p2538_p11 = scmp.ne.s32.totalorder %s46_s13, %s2537_s22  ;;  %p2543_p13 = scmp.lt.s32.totalorder %s2537_s22, %s2537_s22 }
  0x1e   :  { %p2544_p0 = por %p2543_p13, %p2542_p12 }
  0x20   :  { %p2545_p1 = pnand %p2544_p0, %p2538_p11 }
  0x22   :  { %2548 = shalt.err (!%p2545_p1)
}
  0x23   :  { %s2595_s3 = smov 64   ;;  %s2596_s18 = smov 4  }
  0x24   :  { %51 = dma.hbm_to_vmem [thread:$0]  %s3489_s5, 1024, %s46_s13, [#allocation9], %s2595_s3, %s2595_s3, %s2596_s18  }
  0x25   :  { %s66_s27 = sshll.u32 %s3494_s10, 4  ;;  %s67_s27 = int_to_ptr.vmem [resolvable:$true] %s66_s27 }
  0x26   :  { %s2549_s28 = scalar_lea.vmem %s67_s27, 16  ;;  %p2554_p3 = scmp.lt.s32.totalorder %s67_s27, %s67_s27 }
  0x27   :  { %p2550_p2 = scmp.ne.s32.totalorder %s67_s27, %s2549_s28  ;;  %p2555_p4 = scmp.lt.s32.totalorder %s2549_s28, %s2549_s28 }
  0x29   :  { %p2556_p5 = por %p2555_p4, %p2554_p3 }
  0x2b   :  { %p2557_p6 = pnand %p2556_p5, %p2550_p2 }
  0x2d   :  { %2560 = shalt.err (!%p2557_p6)
}
  0x2e   :  { %s2597_s29 = smov [#allocation10]  }
  0x2f   :  { %69 = dma.vmem_to_smem %s67_s27, 16, %s2597_s29, [#allocation7]  }
  0x30   :  { %2583 = dma.done.wait [#allocation5], 4096  }
  0x31   :  { %2584 = vsyncadd [#allocation5], 4294963200 }
  0x32   :  { %2585 = dma.done.wait [#allocation9], 1024  }
  0x33   :  { %2586 = vsyncadd [#allocation9], 4294966272 }
  0x34   :  { %2587 = dma.done.wait [#allocation7], 16  }
  0x35   :  { %2588 = vsyncadd [#allocation7], 4294967280 }
  0x36   :  { %79 = sfence }
  0x37   :  { %v2291_v0 = vld [vmem:[%s3486_s2 + $0x4] ss:$16 sps:$4 sm:$0xff]   ;;  %v2293_v1 = vld [vmem:[%s3486_s2 + $0xc] ss:$16 sps:$4 sm:$0xff]   ;;  %v3497_v2 = vmov 0   ;;  %vm163_vm0 = vcmask 261120   ;;  %v3496_v53 = vlaneseq }
  0x38   :  { %208 = vmatprep.mubr.bf16.mxu0 %v3497_v2  ;;  %281 = vmatprep.mubr.bf16.mxu1 %v3497_v2  ;;  %v2295_v3 = vld [vmem:[%s3486_s2] ss:$16 sps:$4 sm:$0xff]   ;;  %v2296_v4 = vld [vmem:[%s3486_s2 + $0x8] ss:$16 sps:$4 sm:$0xff]   ;;  %v2297_v5 = vld [vmem:[%s3486_s2 + $0x24] ss:$16 sps:$4 sm:$0xff]  }
  0x39   :  { %176 = vmatprep.subr.bf16.mxu0 %v2291_v0  ;;  %2290 = vset.pattern.permute.xlu0 %v3497_v2  ;;  %v2299_v6 = vld [vmem:[%s3486_s2 + $0x2c] ss:$16 sps:$4 sm:$0xff]   ;;  %v2301_v7 = vld [vmem:[%s3486_s2 + $0x20] ss:$16 sps:$4 sm:$0xff]   ;;  %v2302_v8 = vld [vmem:[%s3486_s2 + $0x28] ss:$16 sps:$4 sm:$0xff]  }
  0x3a   :  { %249 = vmatprep.subr.bf16.mxu1 %v2293_v1  ;;  %2289 = vset.pattern.permute.xlu1 %v3497_v2  ;;  %v81_v9 = vld [vmem:[%s3484_s0] sm:$0xff]  ;;  %v82_v10 = vld [vmem:[%s3484_s0 + $0x8] sm:$0xff]  ;;  %v83_v20 = vld [vmem:[%s3484_s0 + $0x10] sm:$0xff]  ;;  %v2893_v54 = vshrl.u32 %v3496_v53, 7  ;;  %vm1445_vm1 = vcmask 1041408   ;;  %vm2600_vm2 = vmmov 0  }
  0x3b   :  { %177 = vmatpush1.bf16.msra.mxu0 %v2295_v3  ;;  %250 = vmatpush1.bf16.msra.mxu1 %v2296_v4  ;;  %v2724_v11 = vld [vmem:[#allocation4 + $0x4] ss:$16 sps:$4 sm:$0xff]   ;;  %v89_v12 = vpack.c.bf16 %v82_v10, %v81_v9  ;;  %v2726_v13 = vld [vmem:[#allocation4 + $0xc] ss:$16 sps:$4 sm:$0xff]   ;;  %v2728_v14 = vld [vmem:[#allocation4] ss:$16 sps:$4 sm:$0xff]  }
  0x3c   :  { %178 = vmatprep.subr.bf16.mxu0 %v2297_v5  ;;  %251 = vmatprep.subr.bf16.mxu1 %v2299_v6  ;;  %v2730_v15 = vld [vmem:[#allocation4 + $0x8] ss:$16 sps:$4 sm:$0xff]   ;;  %v2734_v16 = vld [vmem:[#allocation4 + $0x24] ss:$16 sps:$4 sm:$0xff]   ;;  %v2736_v17 = vld [vmem:[#allocation4 + $0x2c] ss:$16 sps:$4 sm:$0xff]  }
  0x3d   :  { %v2738_v18 = vld [vmem:[#allocation4 + $0x20] ss:$16 sps:$4 sm:$0xff]   ;;  %v2742_v19 = vld [vmem:[#allocation4 + $0x28] ss:$16 sps:$4 sm:$0xff]   ;;  %v2752_v22 = vld [vmem:[#allocation4 + $0x44] ss:$16 sps:$4 sm:$0xff]  }
  0x3e   :  { %v84_v21 = vld [vmem:[%s3484_s0 + $0x18] sm:$0xff]  ;;  %v2762_v25 = vld [vmem:[#allocation4 + $0x40] ss:$16 sps:$4 sm:$0xff]   ;;  %v2768_v27 = vld [vmem:[#allocation4 + $0x64] ss:$16 sps:$4 sm:$0xff]   ;;  %3509 = vst [vmem:[#allocation16_spill] sm:$0xff] %v2893_v54 }
  0x3f   :  { %179 = vmatpush1.bf16.msra.mxu0 %v2301_v7  ;;  %252 = vmatpush1.bf16.msra.mxu1 %v2302_v8  ;;  %v2756_v23 = vld [vmem:[#allocation4 + $0x4c] ss:$16 sps:$4 sm:$0xff]   ;;  %v90_v24 = vpack.c.bf16 %v84_v21, %v83_v20  ;;  %v2764_v26 = vld [vmem:[#allocation4 + $0x48] ss:$16 sps:$4 sm:$0xff]   ;;  %v2772_v29 = vld [vmem:[#allocation4 + $0x60] ss:$16 sps:$4 sm:$0xff]  }
  0x40   :  { %550 = vmatprep.subr.bf16.mxu0 %v2724_v11  ;;  %591 = vmatprep.subr.bf16.mxu1 %v2726_v13  ;;  %v2770_v28 = vld [vmem:[#allocation4 + $0x6c] ss:$16 sps:$4 sm:$0xff]   ;;  %v2774_v30 = vld [vmem:[#allocation4 + $0x68] ss:$16 sps:$4 sm:$0xff]   ;;  %v85_v31 = vld [vmem:[%s3484_s0 + $0x20] sm:$0xff]  ;;  %v2896_v55 = vsub.s32 2, %v2893_v54 }
  0x41   :  { %v86_v32 = vld [vmem:[%s3484_s0 + $0x28] sm:$0xff]  ;;  %v2786_v33 = vld [vmem:[#allocation4 + $0x84] ss:$16 sps:$4 sm:$0xff]   ;;  %v2794_v36 = vld [vmem:[#allocation4 + $0x80] ss:$16 sps:$4 sm:$0xff]   ;;  %v2899_v56 = vsub.s32 3, %v2893_v54 }
  0x42   :  { %2180 = vmatmul.mubr.msk.bf16.vlgmr.msra.gmra.mrb[0].mxu0 %vm163_vm0, %v89_v12  ;;  %2184 = vmatmul.mubr.msk.bf16.vlgmr.msra.gmra.mrb[0].mxu1 %vm163_vm0, %v89_v12  ;;  %v2790_v34 = vld [vmem:[#allocation4 + $0x8c] ss:$16 sps:$4 sm:$0xff]   ;;  %v91_v35 = vpack.c.bf16 %v86_v32, %v85_v31  ;;  %v2796_v37 = vld [vmem:[#allocation4 + $0x88] ss:$16 sps:$4 sm:$0xff]   ;;  %v2800_v38 = vld [vmem:[#allocation4 + $0xa4] ss:$16 sps:$4 sm:$0xff]  }
  0x43   :  { %551 = vmatpush1.bf16.msra.mxu0 %v2728_v14  ;;  %592 = vmatpush1.bf16.msra.mxu1 %v2730_v15  ;;  %v2804_v39 = vld [vmem:[#allocation4 + $0xac] ss:$16 sps:$4 sm:$0xff]   ;;  %v2806_v40 = vld [vmem:[#allocation4 + $0xa0] ss:$16 sps:$4 sm:$0xff]   ;;  %v2810_v41 = vld [vmem:[#allocation4 + $0xa8] ss:$16 sps:$4 sm:$0xff]  }
  0x44   :  { %552 = vmatprep.subr.bf16.mxu0 %v2734_v16  ;;  %593 = vmatprep.subr.bf16.mxu1 %v2736_v17  ;;  %v87_v42 = vld [vmem:[%s3484_s0 + $0x30] sm:$0xff]  ;;  %v88_v43 = vld [vmem:[%s3484_s0 + $0x38] sm:$0xff]  ;;  %3510 = vst [vmem:[#allocation17_spill] sm:$0xff] %v2896_v55  ;;  %3511 = vst [vmem:[#allocation18_spill] sm:$0xff] %v2899_v56  ;;  %v2902_v57 = vsub.s32 0, %v2893_v54  ;;  %v2908_v59 = vsub.s32 1, %v2893_v54 }
  0x45   :  { %218 = vmatprep.mubr.bf16.mxu0 %v3497_v2  ;;  %291 = vmatprep.mubr.bf16.mxu1 %v3497_v2  ;;  %v2822_v44 = vld [vmem:[#allocation4 + $0xc4] ss:$16 sps:$4 sm:$0xff]   ;;  %v2824_v45 = vld [vmem:[#allocation4 + $0xcc] ss:$16 sps:$4 sm:$0xff]   ;;  %v2828_v46 = vld [vmem:[#allocation4 + $0xc0] ss:$16 sps:$4 sm:$0xff]   ;;  %v92_v48 = vpack.c.bf16 %v88_v43, %v87_v42 }
  0x46   :  { %v2830_v47 = vld [vmem:[#allocation4 + $0xc8] ss:$16 sps:$4 sm:$0xff]   ;;  %v2832_v49 = vld [vmem:[#allocation4 + $0xe4] ss:$16 sps:$4 sm:$0xff]   ;;  %v2834_v50 = vld [vmem:[#allocation4 + $0xec] ss:$16 sps:$4 sm:$0xff]  }
  0x47   :  { %553 = vmatpush1.bf16.msra.mxu0 %v2738_v18  ;;  %594 = vmatpush1.bf16.msra.mxu1 %v2742_v19  ;;  %v2844_v51 = vld [vmem:[#allocation4 + $0xe0] ss:$16 sps:$4 sm:$0xff]   ;;  %v2846_v52 = vld [vmem:[#allocation4 + $0xe8] ss:$16 sps:$4 sm:$0xff]   ;;  %3512 = vst [vmem:[#allocation19_spill] sm:$0xff] %v2902_v57  ;;  %3513 = vst [vmem:[#allocation20_spill] sm:$0xff] %v2908_v59 }
  0x48   :  { %554 = vmatprep.subr.bf16.mxu0 %v2752_v22  ;;  %595 = vmatprep.subr.bf16.mxu1 %v2756_v23  ;;  %v101_v58 = vld [vmem:[%s3488_s4] sm:$0xf]  ;;  %vm1441_vm3 = vcmask 31744   ;;  %vm1851_vm4 = vcmask 1041409   ;;  %vm1853_vm5 = vcmask 1042434   ;;  %vm1855_vm6 = vcmask 1043459  }
  0x49   :  { %v2911_v60 = vrot.slane %v101_v58, %v2896_v55  ;;  %v2918_v63 = vrot.slane %v101_v58, %v2899_v56  ;;  %v106_v0 = vrot.slane %v101_v58, %v2902_v57  ;;  %v110_v4 = vrot.slane %v101_v58, %v2908_v59  ;;  %s2602_s24 = smov [#allocation11]  }
  0x4a   :  { %2181 = vmatmul.mubr.msk.bf16.gmra.mrb[4].mxu0 %vm163_vm0, %v90_v24  ;;  %2185 = vmatmul.mubr.msk.bf16.gmra.mrb[4].mxu1 %vm163_vm0, %v90_v24  ;;  %vm1857_vm7 = vcmask 1044484   ;;  %vm1859_vm8 = vcmask 1045509   ;;  %vm1861_vm9 = vcmask 1046534   ;;  %vm1863_vm10 = vcmask 1047559   ;;  %s2161_s25 = sshll.u32 %s2602_s24, 4  ;;  %s2162_s25 = int_to_ptr.vmem [resolvable:$true] %s2161_s25 }
  0x4b   :  { %555 = vmatpush1.bf16.msra.mxu0 %v2762_v25  ;;  %596 = vmatpush1.bf16.msra.mxu1 %v2764_v26  ;;  %vm1866_vm11 = vcmask 64512   ;;  %s2561_s26 = scalar_lea.vmem %s2162_s25, 128  ;;  %p2566_p8 = scmp.lt.s32.totalorder %s2162_s25, %s2162_s25 }
  0x4c   :  { %556 = vmatprep.subr.bf16.mxu0 %v2768_v27  ;;  %597 = vmatprep.subr.bf16.mxu1 %v2770_v28  ;;  %p2562_p7 = scmp.ne.s32.totalorder %s2162_s25, %s2561_s26  ;;  %p2567_p9 = scmp.lt.s32.totalorder %s2561_s26, %s2561_s26 }
  0x4d   :  { %228 = vmatprep.mubr.bf16.mxu0 %v3497_v2  ;;  %301 = vmatprep.mubr.bf16.mxu1 %v3497_v2 }
  0x4e   :  { %p2568_p10 = por %p2567_p9, %p2566_p8 }
  0x4f   :  { %557 = vmatpush1.bf16.msra.mxu0 %v2772_v29  ;;  %598 = vmatpush1.bf16.msra.mxu1 %v2774_v30 }
  0x50   :  { %558 = vmatprep.subr.bf16.mxu0 %v2786_v33  ;;  %599 = vmatprep.subr.bf16.mxu1 %v2790_v34  ;;  %p2569_p11 = pnand %p2568_p10, %p2562_p7 }
  0x52   :  { %2182 = vmatmul.mubr.msk.bf16.gmra.mrb[8].mxu0 %vm163_vm0, %v91_v35  ;;  %2186 = vmatmul.mubr.msk.bf16.gmra.mrb[8].mxu1 %vm163_vm0, %v91_v35 }
  0x53   :  { %559 = vmatpush1.bf16.msra.mxu0 %v2794_v36  ;;  %600 = vmatpush1.bf16.msra.mxu1 %v2796_v37 }
  0x54   :  { %560 = vmatprep.subr.bf16.mxu0 %v2800_v38  ;;  %601 = vmatprep.subr.bf16.mxu1 %v2804_v39 }
  0x55   :  { %238 = vmatprep.mubr.bf16.mxu0 %v3497_v2  ;;  %311 = vmatprep.mubr.bf16.mxu1 %v3497_v2 }
  0x57   :  { %561 = vmatpush1.bf16.msra.mxu0 %v2806_v40  ;;  %602 = vmatpush1.bf16.msra.mxu1 %v2810_v41 }
  0x58   :  { %562 = vmatprep.subr.bf16.mxu0 %v2822_v44  ;;  %603 = vmatprep.subr.bf16.mxu1 %v2824_v45 }
  0x5a   :  { %2183 = vmatmul.mubr.msk.bf16.gmra.mrb[12].mxu0 %vm163_vm0, %v92_v48  ;;  %2187 = vmatmul.mubr.msk.bf16.gmra.mrb[12].mxu1 %vm163_vm0, %v92_v48 }
  0x5b   :  { %563 = vmatpush1.bf16.msra.mxu0 %v2828_v46  ;;  %604 = vmatpush1.bf16.msra.mxu1 %v2830_v47 }
  0x5c   :  { %564 = vmatprep.subr.bf16.mxu0 %v2832_v49  ;;  %605 = vmatprep.subr.bf16.mxu1 %v2834_v50 }
  0x5d   :  { %582 = vmatprep.mubr.bf16.mxu0 %v3497_v2  ;;  %623 = vmatprep.mubr.bf16.mxu1 %v3497_v2 }
  0x5f   :  { %565 = vmatpush1.bf16.msra.mxu0 %v2844_v51  ;;  %606 = vmatpush1.bf16.msra.mxu1 %v2846_v52 }
  0x60   :  { %660 = vmatprep.subr.bf16.mxu0 %v2724_v11  ;;  %701 = vmatprep.subr.bf16.mxu1 %v2726_v13 }
  0x62   :  { %583 = vmatmul.mubr.bf16.vlgmr.msra.gmra.mrb[16].mxu0 %v3497_v2  ;;  %624 = vmatmul.mubr.bf16.vlgmr.msra.gmra.mrb[16].mxu1 %v3497_v2 }
  0x63   :  { %661 = vmatpush1.bf16.msra.mxu0 %v2728_v14  ;;  %702 = vmatpush1.bf16.msra.mxu1 %v2730_v15 }
  0x64   :  { %662 = vmatprep.subr.bf16.mxu0 %v2734_v16  ;;  %703 = vmatprep.subr.bf16.mxu1 %v2736_v17 }
  0x65   :  { %692 = vmatprep.mubr.bf16.mxu0 %v3497_v2  ;;  %733 = vmatprep.mubr.bf16.mxu1 %v3497_v2 }
  0x67   :  { %663 = vmatpush1.bf16.msra.mxu0 %v2738_v18  ;;  %704 = vmatpush1.bf16.msra.mxu1 %v2742_v19 }
  0x68   :  { %664 = vmatprep.subr.bf16.mxu0 %v2752_v22  ;;  %705 = vmatprep.subr.bf16.mxu1 %v2756_v23 }
  0x6b   :  { %665 = vmatpush1.bf16.msra.mxu0 %v2762_v25  ;;  %706 = vmatpush1.bf16.msra.mxu1 %v2764_v26 }
  0x6c   :  { %666 = vmatprep.subr.bf16.mxu0 %v2768_v27  ;;  %707 = vmatprep.subr.bf16.mxu1 %v2770_v28 }
  0x6f   :  { %667 = vmatpush1.bf16.msra.mxu0 %v2772_v29  ;;  %708 = vmatpush1.bf16.msra.mxu1 %v2774_v30 }
  0x70   :  { %668 = vmatprep.subr.bf16.mxu0 %v2786_v33  ;;  %709 = vmatprep.subr.bf16.mxu1 %v2790_v34 }
  0x73   :  { %669 = vmatpush1.bf16.msra.mxu0 %v2794_v36  ;;  %710 = vmatpush1.bf16.msra.mxu1 %v2796_v37 }
  0x74   :  { %670 = vmatprep.subr.bf16.mxu0 %v2800_v38  ;;  %711 = vmatprep.subr.bf16.mxu1 %v2804_v39 }
  0x77   :  { %671 = vmatpush1.bf16.msra.mxu0 %v2806_v40  ;;  %712 = vmatpush1.bf16.msra.mxu1 %v2810_v41 }
  0x78   :  { %672 = vmatprep.subr.bf16.mxu0 %v2822_v44  ;;  %713 = vmatprep.subr.bf16.mxu1 %v2824_v45 }
  0x7b   :  { %673 = vmatpush1.bf16.msra.mxu0 %v2828_v46  ;;  %714 = vmatpush1.bf16.msra.mxu1 %v2830_v47 }
  0x7c   :  { %674 = vmatprep.subr.bf16.mxu0 %v2832_v49  ;;  %715 = vmatprep.subr.bf16.mxu1 %v2834_v50 }
  0x7f   :  { %675 = vmatpush1.bf16.msra.mxu0 %v2844_v51  ;;  %716 = vmatpush1.bf16.msra.mxu1 %v2846_v52 }
  0x80   :  { %773 = vmatprep.subr.bf16.mxu0 %v2724_v11  ;;  %814 = vmatprep.subr.bf16.mxu1 %v2726_v13 }
 0x115   :  { %v2913_v61 = vpop.f32.mrb[0].mxu0  ;;  %v2915_v62 = vpop.f32.mrb[0].mxu1 }
 0x116   :  { %v212_v1 = vpop.f32.mrb[1].mxu0  ;;  %v285_v3 = vpop.f32.mrb[1].mxu1 }
 0x117   :  { %v214_v5 = vpop.f32.mrb[2].mxu0  ;;  %v287_v6 = vpop.f32.mrb[2].mxu1 }
 0x118   :  { %v2922_v7 = vadd.f32 %v214_v5, %v106_v0  ;;  %v216_v8 = vpop.f32.mrb[3].mxu0  ;;  %v2925_v9 = vadd.f32 %v287_v6, %v2911_v60  ;;  %v289_v10 = vpop.f32.mrb[3].mxu1 }
 0x119   :  { %v2927_v12 = vadd.f32 %v216_v8, %v110_v4  ;;  %v2930_v20 = vadd.f32 %v289_v10, %v2918_v63 }
 0x11d   :  { %v220_v21 = vpop.f32.mrb[4].mxu0  ;;  %v293_v24 = vpop.f32.mrb[4].mxu1 }
 0x11e   :  { %v2932_v31 = vadd.f32 %v220_v21, %v106_v0  ;;  %v222_v32 = vpop.f32.mrb[5].mxu0  ;;  %v2935_v35 = vadd.f32 %v293_v24, %v2911_v60  ;;  %v295_v42 = vpop.f32.mrb[5].mxu1 }
 0x11f   :  { %v2937_v43 = vadd.f32 %v222_v32, %v110_v4  ;;  %v224_v48 = vpop.f32.mrb[6].mxu0  ;;  %v2940_v58 = vadd.f32 %v295_v42, %v2918_v63  ;;  %v297_v5 = vpop.f32.mrb[6].mxu1 }
 0x120   :  { %v2942_v6 = vadd.f32 %v224_v48, %v106_v0  ;;  %v226_v8 = vpop.f32.mrb[7].mxu0  ;;  %v2945_v10 = vadd.f32 %v297_v5, %v2911_v60  ;;  %v299_v21 = vpop.f32.mrb[7].mxu1 }
 0x121   :  { %3514 = vst [vmem:[#allocation21_spill] sm:$0xff] %v2940_v58  ;;  %v2947_v53 = vadd.f32 %v226_v8, %v110_v4  ;;  %v2950_v24 = vadd.f32 %v299_v21, %v2918_v63 }
 0x122   :  { %3515 = vst [vmem:[#allocation22_spill] sm:$0xff] %v2942_v6  ;;  %3516 = vst [vmem:[#allocation23_spill] sm:$0xff] %v2945_v10 }
 0x123   :  { %3517 = vst [vmem:[#allocation24_spill] sm:$0xff] %v2947_v53  ;;  %3518 = vst [vmem:[#allocation25_spill] sm:$0xff] %v2950_v24 }
 0x125   :  { %v230_v2 = vpop.f32.mrb[8].mxu0  ;;  %v303_v32 = vpop.f32.mrb[8].mxu1 }
 0x126   :  { %v2952_v56 = vadd.f32 %v230_v2, %v106_v0  ;;  %v232_v55 = vpop.f32.mrb[9].mxu0  ;;  %v2955_v42 = vadd.f32 %v303_v32, %v2911_v60  ;;  %v305_v48 = vpop.f32.mrb[9].mxu1 }
 0x127   :  { %v2957_v59 = vadd.f32 %v232_v55, %v110_v4  ;;  %v234_v57 = vpop.f32.mrb[10].mxu0  ;;  %v2960_v5 = vadd.f32 %v305_v48, %v2918_v63  ;;  %v307_v8 = vpop.f32.mrb[10].mxu1 }
 0x128   :  { %3519 = vst [vmem:[#allocation26_spill] sm:$0xff] %v2952_v56  ;;  %3520 = vst [vmem:[#allocation27_spill] sm:$0xff] %v2955_v42  ;;  %v2962_v54 = vadd.f32 %v234_v57, %v106_v0  ;;  %v236_v21 = vpop.f32.mrb[11].mxu0  ;;  %v2965_v24 = vadd.f32 %v307_v8, %v2911_v60  ;;  %v309_v2 = vpop.f32.mrb[11].mxu1 }
 0x129   :  { %3521 = vst [vmem:[#allocation28_spill] sm:$0xff] %v2957_v59  ;;  %3522 = vst [vmem:[#allocation29_spill] sm:$0xff] %v2960_v5  ;;  %v2967_v56 = vadd.f32 %v236_v21, %v110_v4  ;;  %v2970_v32 = vadd.f32 %v309_v2, %v2918_v63 }
 0x12a   :  { %3523 = vst [vmem:[#allocation30_spill] sm:$0xff] %v2962_v54  ;;  %3524 = vst [vmem:[#allocation31_spill] sm:$0xff] %v2965_v24 }
 0x12b   :  { %3525 = vst [vmem:[#allocation32_spill] sm:$0xff] %v2967_v56  ;;  %3526 = vst [vmem:[#allocation33_spill] sm:$0xff] %v2970_v32 }
 0x12d   :  { %v240_v42 = vpop.f32.mrb[12].mxu0  ;;  %v313_v55 = vpop.f32.mrb[12].mxu1 }
 0x12e   :  { %v2972_v59 = vadd.f32 %v240_v42, %v106_v0  ;;  %v242_v53 = vpop.f32.mrb[13].mxu0  ;;  %v2975_v48 = vadd.f32 %v313_v55, %v2911_v60  ;;  %v315_v57 = vpop.f32.mrb[13].mxu1 }
 0x12f   :  { %v2977_v54 = vadd.f32 %v242_v53, %v110_v4  ;;  %v244_v5 = vpop.f32.mrb[14].mxu0  ;;  %v2980_v8 = vadd.f32 %v315_v57, %v2918_v63  ;;  %v317_v21 = vpop.f32.mrb[14].mxu1  ;;  %v211_v53 = vadd.f32 %v2913_v61, %v106_v0  ;;  %v213_v57 = vadd.f32 %v212_v1, %v110_v4 }
 0x130   :  { %3527 = vst [vmem:[#allocation34_spill] sm:$0xff] %v2972_v59  ;;  %3528 = vst [vmem:[#allocation35_spill] sm:$0xff] %v2975_v48  ;;  %v2982_v56 = vadd.f32 %v244_v5, %v106_v0  ;;  %v246_v2 = vpop.f32.mrb[15].mxu0  ;;  %v2985_v32 = vadd.f32 %v317_v21, %v2911_v60  ;;  %v319_v42 = vpop.f32.mrb[15].mxu1 }
 0x131   :  { %3529 = vst [vmem:[#allocation36_spill] sm:$0xff] %v2977_v54  ;;  %3530 = vst [vmem:[#allocation37_spill] sm:$0xff] %v2980_v8  ;;  %v2987_v59 = vadd.f32 %v246_v2, %v110_v4  ;;  %v2990_v55 = vadd.f32 %v319_v42, %v2918_v63  ;;  %v284_v54 = vadd.f32 %v2915_v62, %v2911_v60 }
 0x132   :  { %3531 = vst [vmem:[#allocation38_spill] sm:$0xff] %v2982_v56  ;;  %3532 = vst [vmem:[#allocation39_spill] sm:$0xff] %v2985_v32  ;;  %v286_v8 = vadd.f32 %v285_v3, %v2918_v63 }
 0x133   :  { %3533 = vst [vmem:[#allocation40_spill] sm:$0xff] %v2987_v59  ;;  %3534 = vst [vmem:[#allocation41_spill] sm:$0xff] %v2990_v55 }
 0x135   :  { %v584_v5 = vpop.f32.mrb[16].mxu0  ;;  %v625_v56 = vpop.f32.mrb[16].mxu1 }
 0x136   :  { %v632_v48 = vadd.f32 %v584_v5, %v211_v53  ;;  %v634_v24 = vadd.f32 %v625_v56, %v284_v54  ;;  %v586_v21 = vpop.f32.mrb[17].mxu0  ;;  %v627_v32 = vpop.f32.mrb[17].mxu1 }
 0x137   :  { %v633_v10 = vadd.f32 %v586_v21, %v213_v57  ;;  %v635_v2 = vadd.f32 %v627_v32, %v286_v8  ;;  %v588_v59 = vpop.f32.mrb[18].mxu0  ;;  %v629_v6 = vpop.f32.mrb[18].mxu1 }
 0x138   :  { %v636_v42 = vmul.f32 0.5, %v632_v48  ;;  %v589_v55 = vpop.f32.mrb[19].mxu0  ;;  %v630_v58 = vpop.f32.mrb[19].mxu1 }
 0x139   :  { %v640_v61 = vmul.f32 0.5, %v633_v10  ;;  %v645_v60 = vmul.f32 0.5, %v635_v2  ;;  %v3535_v55 = vmov 0  }
 0x13a   :  { %2359 = vtanh.f32 %v636_v42 }
 0x13b   :  { %2361 = vtanh.f32 %v640_v61 }
 0x13c   :  { %2363 = vtanh.f32 %v634_v24 }
 0x13d   :  { %2365 = vtanh.f32 %v645_v60 }
 0x144   :  { %v2360_v62 = vpop.eup %2359 }
 0x145   :  { %v2362_v63 = vpop.eup %2361  ;;  %v638_v0 = vadd.f32 1.0, %v2360_v62 }
 0x146   :  { %v642_v1 = vadd.f32 1.0, %v2362_v63  ;;  %v2364_v56 = vpop.eup %2363 }
 0x147   :  { %v639_v54 = vmul.f32 0.5, %v638_v0  ;;  %v2366_v58 = vpop.eup %2365 }
 0x148   :  { %v643_v3 = vmul.f32 0.5, %v642_v1  ;;  %v647_v6 = vadd.f32 1.0, %v2366_v58 }
 0x149   :  { %v650_v4 = vmul.f32 %v2364_v56, %v639_v54 }
 0x14a   :  { %v649_v32 = vmul.f32 0.0, %v643_v3  ;;  %v648_v10 = vmul.f32 0.5, %v647_v6 }
 0x14c   :  { %v2996_v59 = vadd.f32 %v650_v4, %v649_v32 }
 0x14e   :  { %2367 = vtanh.f32 %v2996_v59 }
 0x158   :  { %v2368_v48 = vpop.eup %2367 }
 0x159   :  { %v653_v24 = vmul.f32 %v2368_v48, %v648_v10 }
 0x15b   :  { %v654_v8 = vpack.c.bf16 %v653_v24, %v653_v24 }
 0x15d   :  { %655 = vst [vmem:[#allocation3] sm:$0xf] %v654_v8  ;;  %693 = vmatmul.mubr.bf16.vlgmr.msra.gmra.mrb[20].mxu0 %v654_v8  ;;  %734 = vmatmul.mubr.bf16.vlgmr.msra.gmra.mrb[20].mxu1 %v654_v8 }
 0x15e   :  { %774 = vmatpush1.bf16.msra.mxu0 %v2728_v14  ;;  %815 = vmatpush1.bf16.msra.mxu1 %v2730_v15 }
 0x15f   :  { %775 = vmatprep.subr.bf16.mxu0 %v2734_v16  ;;  %816 = vmatprep.subr.bf16.mxu1 %v2736_v17 }
 0x160   :  { %805 = vmatprep.mubr.bf16.mxu0 %v3535_v55  ;;  %846 = vmatprep.mubr.bf16.mxu1 %v3535_v55 }
 0x162   :  { %776 = vmatpush1.bf16.msra.mxu0 %v2738_v18  ;;  %817 = vmatpush1.bf16.msra.mxu1 %v2742_v19 }
 0x163   :  { %777 = vmatprep.subr.bf16.mxu0 %v2752_v22  ;;  %818 = vmatprep.subr.bf16.mxu1 %v2756_v23 }
 0x166   :  { %778 = vmatpush1.bf16.msra.mxu0 %v2762_v25  ;;  %819 = vmatpush1.bf16.msra.mxu1 %v2764_v26 }
 0x167   :  { %779 = vmatprep.subr.bf16.mxu0 %v2768_v27  ;;  %820 = vmatprep.subr.bf16.mxu1 %v2770_v28 }
 0x16a   :  { %780 = vmatpush1.bf16.msra.mxu0 %v2772_v29  ;;  %821 = vmatpush1.bf16.msra.mxu1 %v2774_v30 }
 0x16b   :  { %781 = vmatprep.subr.bf16.mxu0 %v2786_v33  ;;  %822 = vmatprep.subr.bf16.mxu1 %v2790_v34 }
 0x16e   :  { %782 = vmatpush1.bf16.msra.mxu0 %v2794_v36  ;;  %823 = vmatpush1.bf16.msra.mxu1 %v2796_v37 }
 0x16f   :  { %783 = vmatprep.subr.bf16.mxu0 %v2800_v38  ;;  %824 = vmatprep.subr.bf16.mxu1 %v2804_v39 }
 0x172   :  { %784 = vmatpush1.bf16.msra.mxu0 %v2806_v40  ;;  %825 = vmatpush1.bf16.msra.mxu1 %v2810_v41 }
 0x173   :  { %785 = vmatprep.subr.bf16.mxu0 %v2822_v44  ;;  %826 = vmatprep.subr.bf16.mxu1 %v2824_v45 }
 0x176   :  { %786 = vmatpush1.bf16.msra.mxu0 %v2828_v46  ;;  %827 = vmatpush1.bf16.msra.mxu1 %v2830_v47 }
 0x177   :  { %787 = vmatprep.subr.bf16.mxu0 %v2832_v49  ;;  %828 = vmatprep.subr.bf16.mxu1 %v2834_v50 }
 0x17a   :  { %788 = vmatpush1.bf16.msra.mxu0 %v2844_v51  ;;  %829 = vmatpush1.bf16.msra.mxu1 %v2846_v52 }
 0x17b   :  { %883 = vmatprep.subr.bf16.mxu0 %v2724_v11  ;;  %924 = vmatprep.subr.bf16.mxu1 %v2726_v13 }
 0x230   :  { %v694_v53 = vpop.f32.mrb[20].mxu0  ;;  %v735_v57 = vpop.f32.mrb[20].mxu1 }
 0x231   :  { %v742_v5 = vadd.f32 %v694_v53, %v2922_v7  ;;  %v744_v21 = vadd.f32 %v735_v57, %v2925_v9  ;;  %v696_v2 = vpop.f32.mrb[21].mxu0  ;;  %v737_v42 = vpop.f32.mrb[21].mxu1 }
 0x232   :  { %v743_v61 = vadd.f32 %v696_v2, %v2927_v12  ;;  %v745_v60 = vadd.f32 %v737_v42, %v2930_v20  ;;  %v698_v62 = vpop.f32.mrb[22].mxu0  ;;  %v739_v63 = vpop.f32.mrb[22].mxu1 }
 0x233   :  { %v746_v0 = vmul.f32 0.5, %v742_v5  ;;  %v699_v1 = vpop.f32.mrb[23].mxu0  ;;  %v740_v54 = vpop.f32.mrb[23].mxu1 }
 0x234   :  { %v750_v56 = vmul.f32 0.5, %v743_v61  ;;  %v755_v3 = vmul.f32 0.5, %v745_v60  ;;  %v3536_v1 = vld [vmem:[#allocation21_spill] sm:$0xff] }
 0x235   :  { %2369 = vtanh.f32 %v746_v0 }
 0x236   :  { %2371 = vtanh.f32 %v750_v56 }
 0x237   :  { %2373 = vtanh.f32 %v744_v21 }
 0x238   :  { %2375 = vtanh.f32 %v755_v3 }
 0x23f   :  { %v2370_v4 = vpop.eup %2369 }
 0x240   :  { %v2372_v7 = vpop.eup %2371  ;;  %v748_v32 = vadd.f32 1.0, %v2370_v4 }
 0x241   :  { %v752_v9 = vadd.f32 1.0, %v2372_v7  ;;  %v2374_v6 = vpop.eup %2373 }
 0x242   :  { %v749_v58 = vmul.f32 0.5, %v748_v32  ;;  %v2376_v24 = vpop.eup %2375 }
 0x243   :  { %v753_v12 = vmul.f32 0.5, %v752_v9  ;;  %v757_v8 = vadd.f32 1.0, %v2376_v24 }
 0x244   :  { %v760_v10 = vmul.f32 %v2374_v6, %v749_v58 }
 0x245   :  { %v759_v20 = vmul.f32 %v753_v12, %v2996_v59  ;;  %v758_v53 = vmul.f32 0.5, %v757_v8 }
 0x247   :  { %v3038_v48 = vadd.f32 %v760_v10, %v759_v20 }
 0x249   :  { %2377 = vtanh.f32 %v3038_v48 }
 0x253   :  { %v2378_v57 = vpop.eup %2377 }
 0x254   :  { %v763_v5 = vmul.f32 %v2378_v57, %v758_v53 }
 0x256   :  { %v764_v21 = vpack.c.bf16 %v763_v5, %v763_v5 }
 0x258   :  { %v766_v2 = vrot.slane %v764_v21, 4  ;;  %806 = vmatmul.mubr.bf16.vlgmr.msra.gmra.mrb[24].mxu0 %v764_v21  ;;  %847 = vmatmul.mubr.bf16.vlgmr.msra.gmra.mrb[24].mxu1 %v764_v21 }
 0x259   :  { %884 = vmatpush1.bf16.msra.mxu0 %v2728_v14  ;;  %925 = vmatpush1.bf16.msra.mxu1 %v2730_v15 }
 0x25a   :  { %768 = vst [vmem:[#allocation3] sm:$0xf0] %v766_v2  ;;  %885 = vmatprep.subr.bf16.mxu0 %v2734_v16  ;;  %926 = vmatprep.subr.bf16.mxu1 %v2736_v17 }
 0x25b   :  { %915 = vmatprep.mubr.bf16.mxu0 %v3535_v55  ;;  %956 = vmatprep.mubr.bf16.mxu1 %v3535_v55 }
 0x25d   :  { %886 = vmatpush1.bf16.msra.mxu0 %v2738_v18  ;;  %927 = vmatpush1.bf16.msra.mxu1 %v2742_v19 }
 0x25e   :  { %887 = vmatprep.subr.bf16.mxu0 %v2752_v22  ;;  %928 = vmatprep.subr.bf16.mxu1 %v2756_v23 }
 0x261   :  { %888 = vmatpush1.bf16.msra.mxu0 %v2762_v25  ;;  %929 = vmatpush1.bf16.msra.mxu1 %v2764_v26 }
 0x262   :  { %889 = vmatprep.subr.bf16.mxu0 %v2768_v27  ;;  %930 = vmatprep.subr.bf16.mxu1 %v2770_v28 }
 0x265   :  { %890 = vmatpush1.bf16.msra.mxu0 %v2772_v29  ;;  %931 = vmatpush1.bf16.msra.mxu1 %v2774_v30 }
 0x266   :  { %891 = vmatprep.subr.bf16.mxu0 %v2786_v33  ;;  %932 = vmatprep.subr.bf16.mxu1 %v2790_v34 }
 0x269   :  { %892 = vmatpush1.bf16.msra.mxu0 %v2794_v36  ;;  %933 = vmatpush1.bf16.msra.mxu1 %v2796_v37 }
 0x26a   :  { %893 = vmatprep.subr.bf16.mxu0 %v2800_v38  ;;  %934 = vmatprep.subr.bf16.mxu1 %v2804_v39 }
 0x26d   :  { %894 = vmatpush1.bf16.msra.mxu0 %v2806_v40  ;;  %935 = vmatpush1.bf16.msra.mxu1 %v2810_v41 }
 0x26e   :  { %895 = vmatprep.subr.bf16.mxu0 %v2822_v44  ;;  %936 = vmatprep.subr.bf16.mxu1 %v2824_v45 }
 0x271   :  { %896 = vmatpush1.bf16.msra.mxu0 %v2828_v46  ;;  %937 = vmatpush1.bf16.msra.mxu1 %v2830_v47 }
 0x272   :  { %897 = vmatprep.subr.bf16.mxu0 %v2832_v49  ;;  %938 = vmatprep.subr.bf16.mxu1 %v2834_v50 }
 0x275   :  { %898 = vmatpush1.bf16.msra.mxu0 %v2844_v51  ;;  %939 = vmatpush1.bf16.msra.mxu1 %v2846_v52 }
 0x276   :  { %996 = vmatprep.subr.bf16.mxu0 %v2724_v11  ;;  %1037 = vmatprep.subr.bf16.mxu1 %v2726_v13 }
 0x32b   :  { %v807_v59 = vpop.f32.mrb[24].mxu0  ;;  %v848_v42 = vpop.f32.mrb[24].mxu1 }
 0x32c   :  { %v855_v61 = vadd.f32 %v807_v59, %v2932_v31  ;;  %v857_v60 = vadd.f32 %v848_v42, %v2935_v35  ;;  %v809_v62 = vpop.f32.mrb[25].mxu0  ;;  %v850_v63 = vpop.f32.mrb[25].mxu1 }
 0x32d   :  { %v856_v0 = vadd.f32 %v809_v62, %v2937_v43  ;;  %v858_v54 = vadd.f32 %v850_v63, %v3536_v1  ;;  %v811_v56 = vpop.f32.mrb[26].mxu0  ;;  %v852_v3 = vpop.f32.mrb[26].mxu1  ;;  %v3538_v63 = vld [vmem:[#allocation23_spill] sm:$0xff] }
 0x32e   :  { %v859_v4 = vmul.f32 0.5, %v855_v61  ;;  %v812_v7 = vpop.f32.mrb[27].mxu0  ;;  %v853_v32 = vpop.f32.mrb[27].mxu1  ;;  %v3539_v56 = vld [vmem:[#allocation24_spill] sm:$0xff] }
 0x32f   :  { %v863_v9 = vmul.f32 0.5, %v856_v0  ;;  %v868_v58 = vmul.f32 0.5, %v858_v54 }
 0x330   :  { %2379 = vtanh.f32 %v859_v4  ;;  %v3540_v4 = vld [vmem:[#allocation25_spill] sm:$0xff] }
 0x331   :  { %2381 = vtanh.f32 %v863_v9 }
 0x332   :  { %2383 = vtanh.f32 %v857_v60  ;;  %v3537_v60 = vld [vmem:[#allocation22_spill] sm:$0xff] }
 0x333   :  { %2385 = vtanh.f32 %v868_v58 }
 0x33a   :  { %v2380_v6 = vpop.eup %2379 }
 0x33b   :  { %v2382_v31 = vpop.eup %2381  ;;  %v861_v12 = vadd.f32 1.0, %v2380_v6 }
 0x33c   :  { %v865_v35 = vadd.f32 1.0, %v2382_v31  ;;  %v2384_v20 = vpop.eup %2383 }
 0x33d   :  { %v862_v10 = vmul.f32 0.5, %v861_v12  ;;  %v2386_v57 = vpop.eup %2385 }
 0x33e   :  { %v866_v43 = vmul.f32 0.5, %v865_v35  ;;  %v870_v5 = vadd.f32 1.0, %v2386_v57 }
 0x33f   :  { %v873_v24 = vmul.f32 %v2384_v20, %v862_v10 }
 0x340   :  { %v872_v8 = vmul.f32 %v866_v43, %v3038_v48  ;;  %v871_v21 = vmul.f32 0.5, %v870_v5 }
 0x342   :  { %v3080_v53 = vadd.f32 %v873_v24, %v872_v8 }
 0x344   :  { %2387 = vtanh.f32 %v3080_v53 }
 0x34e   :  { %v2388_v2 = vpop.eup %2387 }
 0x34f   :  { %v876_v59 = vmul.f32 %v2388_v2, %v871_v21 }
 0x351   :  { %v877_v42 = vpack.c.bf16 %v876_v59, %v876_v59 }
 0x353   :  { %878 = vst [vmem:[#allocation3 + $0x8] sm:$0xf] %v877_v42  ;;  %916 = vmatmul.mubr.bf16.vlgmr.msra.gmra.mrb[28].mxu0 %v877_v42  ;;  %957 = vmatmul.mubr.bf16.vlgmr.msra.gmra.mrb[28].mxu1 %v877_v42 }
 0x354   :  { %997 = vmatpush1.bf16.msra.mxu0 %v2728_v14  ;;  %1038 = vmatpush1.bf16.msra.mxu1 %v2730_v15 }
 0x355   :  { %998 = vmatprep.subr.bf16.mxu0 %v2734_v16  ;;  %1039 = vmatprep.subr.bf16.mxu1 %v2736_v17 }
 0x356   :  { %1028 = vmatprep.mubr.bf16.mxu0 %v3535_v55  ;;  %1069 = vmatprep.mubr.bf16.mxu1 %v3535_v55 }
 0x358   :  { %999 = vmatpush1.bf16.msra.mxu0 %v2738_v18  ;;  %1040 = vmatpush1.bf16.msra.mxu1 %v2742_v19 }
 0x359   :  { %1000 = vmatprep.subr.bf16.mxu0 %v2752_v22  ;;  %1041 = vmatprep.subr.bf16.mxu1 %v2756_v23 }
 0x35c   :  { %1001 = vmatpush1.bf16.msra.mxu0 %v2762_v25  ;;  %1042 = vmatpush1.bf16.msra.mxu1 %v2764_v26 }
 0x35d   :  { %1002 = vmatprep.subr.bf16.mxu0 %v2768_v27  ;;  %1043 = vmatprep.subr.bf16.mxu1 %v2770_v28 }
 0x360   :  { %1003 = vmatpush1.bf16.msra.mxu0 %v2772_v29  ;;  %1044 = vmatpush1.bf16.msra.mxu1 %v2774_v30 }
 0x361   :  { %1004 = vmatprep.subr.bf16.mxu0 %v2786_v33  ;;  %1045 = vmatprep.subr.bf16.mxu1 %v2790_v34 }
 0x364   :  { %1005 = vmatpush1.bf16.msra.mxu0 %v2794_v36  ;;  %1046 = vmatpush1.bf16.msra.mxu1 %v2796_v37 }
 0x365   :  { %1006 = vmatprep.subr.bf16.mxu0 %v2800_v38  ;;  %1047 = vmatprep.subr.bf16.mxu1 %v2804_v39 }
 0x368   :  { %1007 = vmatpush1.bf16.msra.mxu0 %v2806_v40  ;;  %1048 = vmatpush1.bf16.msra.mxu1 %v2810_v41 }
 0x369   :  { %1008 = vmatprep.subr.bf16.mxu0 %v2822_v44  ;;  %1049 = vmatprep.subr.bf16.mxu1 %v2824_v45 }
 0x36c   :  { %1009 = vmatpush1.bf16.msra.mxu0 %v2828_v46  ;;  %1050 = vmatpush1.bf16.msra.mxu1 %v2830_v47 }
 0x36d   :  { %1010 = vmatprep.subr.bf16.mxu0 %v2832_v49  ;;  %1051 = vmatprep.subr.bf16.mxu1 %v2834_v50 }
 0x370   :  { %1011 = vmatpush1.bf16.msra.mxu0 %v2844_v51  ;;  %1052 = vmatpush1.bf16.msra.mxu1 %v2846_v52 }
 0x371   :  { %1106 = vmatprep.subr.bf16.mxu0 %v2724_v11  ;;  %1147 = vmatprep.subr.bf16.mxu1 %v2726_v13 }
 0x426   :  { %v917_v48 = vpop.f32.mrb[28].mxu0  ;;  %v958_v61 = vpop.f32.mrb[28].mxu1 }
 0x427   :  { %v965_v62 = vadd.f32 %v917_v48, %v3537_v60  ;;  %v967_v0 = vadd.f32 %v958_v61, %v3538_v63  ;;  %v919_v1 = vpop.f32.mrb[29].mxu0  ;;  %v960_v54 = vpop.f32.mrb[29].mxu1 }
 0x428   :  { %v966_v3 = vadd.f32 %v919_v1, %v3539_v56  ;;  %v968_v7 = vadd.f32 %v960_v54, %v3540_v4  ;;  %v921_v32 = vpop.f32.mrb[30].mxu0  ;;  %v962_v9 = vpop.f32.mrb[30].mxu1 }
 0x429   :  { %v969_v58 = vmul.f32 0.5, %v965_v62  ;;  %v922_v6 = vpop.f32.mrb[31].mxu0  ;;  %v963_v31 = vpop.f32.mrb[31].mxu1 }
 0x42a   :  { %v973_v11 = vmul.f32 0.5, %v966_v3  ;;  %v978_v13 = vmul.f32 0.5, %v968_v7 }
 0x42b   :  { %2389 = vtanh.f32 %v969_v58 }
 0x42c   :  { %2391 = vtanh.f32 %v973_v11 }
 0x42d   :  { %2393 = vtanh.f32 %v967_v0 }
 0x42e   :  { %2395 = vtanh.f32 %v978_v13  ;;  %v3171_v13 = vld [vmem:[#allocation4] ss:$16 sps:$4 sm:$0xff]  }
 0x435   :  { %v2390_v12 = vpop.eup %2389 }
 0x436   :  { %v2392_v35 = vpop.eup %2391  ;;  %v971_v10 = vadd.f32 1.0, %v2390_v12  ;;  %v3174_v12 = vld [vmem:[#allocation4 + $0x8] ss:$16 sps:$4 sm:$0xff]  }
 0x437   :  { %v975_v20 = vadd.f32 1.0, %v2392_v35  ;;  %v2394_v24 = vpop.eup %2393  ;;  %v3177_v35 = vld [vmem:[#allocation4 + $0x24] ss:$16 sps:$4 sm:$0xff]  }
 0x438   :  { %v972_v43 = vmul.f32 0.5, %v971_v10  ;;  %v2396_v2 = vpop.eup %2395  ;;  %v3180_v10 = vld [vmem:[#allocation4 + $0x2c] ss:$16 sps:$4 sm:$0xff]  }
 0x439   :  { %v976_v8 = vmul.f32 0.5, %v975_v20  ;;  %v980_v59 = vadd.f32 1.0, %v2396_v2  ;;  %v3185_v20 = vld [vmem:[#allocation4 + $0x20] ss:$16 sps:$4 sm:$0xff]   ;;  %v3206_v2 = vld [vmem:[#allocation4 + $0x6c] ss:$16 sps:$4 sm:$0xff]  }
 0x43a   :  { %v983_v57 = vmul.f32 %v2394_v24, %v972_v43  ;;  %v3188_v43 = vld [vmem:[#allocation4 + $0x28] ss:$16 sps:$4 sm:$0xff]   ;;  %v3191_v24 = vld [vmem:[#allocation4 + $0x44] ss:$16 sps:$4 sm:$0xff]  }
 0x43b   :  { %v982_v5 = vmul.f32 %v976_v8, %v3080_v53  ;;  %v981_v42 = vmul.f32 0.5, %v980_v59  ;;  %v3194_v8 = vld [vmem:[#allocation4 + $0x4c] ss:$16 sps:$4 sm:$0xff]   ;;  %v3209_v59 = vld [vmem:[#allocation4 + $0x60] ss:$16 sps:$4 sm:$0xff]  }
 0x43d   :  { %v3122_v21 = vadd.f32 %v983_v57, %v982_v5  ;;  %v3197_v57 = vld [vmem:[#allocation4 + $0x40] ss:$16 sps:$4 sm:$0xff]   ;;  %v3200_v5 = vld [vmem:[#allocation4 + $0x48] ss:$16 sps:$4 sm:$0xff]  }
 0x43f   :  { %2397 = vtanh.f32 %v3122_v21 }
 0x449   :  { %v2398_v48 = vpop.eup %2397 }
 0x44a   :  { %v986_v61 = vmul.f32 %v2398_v48, %v981_v42  ;;  %v3212_v42 = vld [vmem:[#allocation4 + $0x68] ss:$16 sps:$4 sm:$0xff]   ;;  %v3215_v48 = vld [vmem:[#allocation4 + $0x84] ss:$16 sps:$4 sm:$0xff]  }
 0x44c   :  { %v987_v60 = vpack.c.bf16 %v986_v61, %v986_v61  ;;  %v3218_v61 = vld [vmem:[#allocation4 + $0x8c] ss:$16 sps:$4 sm:$0xff]  }
 0x44e   :  { %v989_v62 = vrot.slane %v987_v60, 4  ;;  %1029 = vmatmul.mubr.bf16.vlgmr.msra.gmra.mrb[32].mxu0 %v987_v60  ;;  %1070 = vmatmul.mubr.bf16.vlgmr.msra.gmra.mrb[32].mxu1 %v987_v60  ;;  %v3221_v60 = vld [vmem:[#allocation4 + $0x80] ss:$16 sps:$4 sm:$0xff]  }
 0x44f   :  { %1107 = vmatpush1.bf16.msra.mxu0 %v2728_v14  ;;  %1148 = vmatpush1.bf16.msra.mxu1 %v2730_v15  ;;  %v3157_v14 = vld [vmem:[#allocation4 + $0x4] ss:$16 sps:$4 sm:$0xff]   ;;  %v3160_v15 = vld [vmem:[#allocation4 + $0xc] ss:$16 sps:$4 sm:$0xff]  }
 0x450   :  { %991 = vst [vmem:[#allocation3 + $0x8] sm:$0xf0] %v989_v62  ;;  %1108 = vmatprep.subr.bf16.mxu0 %v2734_v16  ;;  %1149 = vmatprep.subr.bf16.mxu1 %v2736_v17  ;;  %v3224_v62 = vld [vmem:[#allocation4 + $0x88] ss:$16 sps:$4 sm:$0xff]  }
 0x451   :  { %1138 = vmatprep.mubr.bf16.mxu0 %v3535_v55  ;;  %1179 = vmatprep.mubr.bf16.mxu1 %v3535_v55 }
 0x453   :  { %1109 = vmatpush1.bf16.msra.mxu0 %v2738_v18  ;;  %1150 = vmatpush1.bf16.msra.mxu1 %v2742_v19  ;;  %v3541_v18 = vld [vmem:[#allocation26_spill] sm:$0xff] }
 0x454   :  { %1110 = vmatprep.subr.bf16.mxu0 %v2752_v22  ;;  %1151 = vmatprep.subr.bf16.mxu1 %v2756_v23  ;;  %v3542_v22 = vld [vmem:[#allocation27_spill] sm:$0xff] }
 0x457   :  { %1111 = vmatpush1.bf16.msra.mxu0 %v2762_v25  ;;  %1152 = vmatpush1.bf16.msra.mxu1 %v2764_v26 }
 0x458   :  { %1112 = vmatprep.subr.bf16.mxu0 %v2768_v27  ;;  %1153 = vmatprep.subr.bf16.mxu1 %v2770_v28  ;;  %v3543_v27 = vld [vmem:[#allocation28_spill] sm:$0xff] }
 0x45b   :  { %1113 = vmatpush1.bf16.msra.mxu0 %v2772_v29  ;;  %1154 = vmatpush1.bf16.msra.mxu1 %v2774_v30  ;;  %v3544_v29 = vld [vmem:[#allocation29_spill] sm:$0xff] }
 0x45c   :  { %1114 = vmatprep.subr.bf16.mxu0 %v2786_v33  ;;  %1155 = vmatprep.subr.bf16.mxu1 %v2790_v34 }
 0x45f   :  { %1115 = vmatpush1.bf16.msra.mxu0 %v2794_v36  ;;  %1156 = vmatpush1.bf16.msra.mxu1 %v2796_v37 }
 0x460   :  { %1116 = vmatprep.subr.bf16.mxu0 %v2800_v38  ;;  %1157 = vmatprep.subr.bf16.mxu1 %v2804_v39 }
 0x463   :  { %1117 = vmatpush1.bf16.msra.mxu0 %v2806_v40  ;;  %1158 = vmatpush1.bf16.msra.mxu1 %v2810_v41 }
 0x464   :  { %1118 = vmatprep.subr.bf16.mxu0 %v2822_v44  ;;  %1159 = vmatprep.subr.bf16.mxu1 %v2824_v45 }
 0x467   :  { %1119 = vmatpush1.bf16.msra.mxu0 %v2828_v46  ;;  %1160 = vmatpush1.bf16.msra.mxu1 %v2830_v47 }
 0x468   :  { %1120 = vmatprep.subr.bf16.mxu0 %v2832_v49  ;;  %1161 = vmatprep.subr.bf16.mxu1 %v2834_v50 }
 0x46b   :  { %1121 = vmatpush1.bf16.msra.mxu0 %v2844_v51  ;;  %1162 = vmatpush1.bf16.msra.mxu1 %v2846_v52 }
 0x46c   :  { %1219 = vmatprep.subr.bf16.mxu0 %v3157_v14  ;;  %1260 = vmatprep.subr.bf16.mxu1 %v3160_v15 }
 0x521   :  { %v1030_v16 = vpop.f32.mrb[32].mxu0  ;;  %v1071_v17 = vpop.f32.mrb[32].mxu1 }
 0x522   :  { %v1078_v19 = vadd.f32 %v1030_v16, %v3541_v18  ;;  %v1080_v23 = vadd.f32 %v1071_v17, %v3542_v22  ;;  %v1032_v25 = vpop.f32.mrb[33].mxu0  ;;  %v1073_v26 = vpop.f32.mrb[33].mxu1  ;;  %v3227_v16 = vld [vmem:[#allocation4 + $0xa4] ss:$16 sps:$4 sm:$0xff]   ;;  %v3230_v17 = vld [vmem:[#allocation4 + $0xac] ss:$16 sps:$4 sm:$0xff]  }
 0x523   :  { %v1079_v28 = vadd.f32 %v1032_v25, %v3543_v27  ;;  %v1081_v30 = vadd.f32 %v1073_v26, %v3544_v29  ;;  %v1034_v33 = vpop.f32.mrb[34].mxu0  ;;  %v1075_v34 = vpop.f32.mrb[34].mxu1  ;;  %v3233_v18 = vld [vmem:[#allocation4 + $0xa0] ss:$16 sps:$4 sm:$0xff]   ;;  %v3547_v27 = vld [vmem:[#allocation32_spill] sm:$0xff] }
 0x524   :  { %v1082_v36 = vmul.f32 0.5, %v1078_v19  ;;  %v1035_v37 = vpop.f32.mrb[35].mxu0  ;;  %v1076_v38 = vpop.f32.mrb[35].mxu1  ;;  %v3236_v19 = vld [vmem:[#allocation4 + $0xa8] ss:$16 sps:$4 sm:$0xff]   ;;  %v3546_v25 = vld [vmem:[#allocation31_spill] sm:$0xff] }
 0x525   :  { %v1086_v39 = vmul.f32 0.5, %v1079_v28  ;;  %v1091_v40 = vmul.f32 0.5, %v1081_v30  ;;  %v3548_v28 = vld [vmem:[#allocation33_spill] sm:$0xff] }
 0x526   :  { %2399 = vtanh.f32 %v1082_v36 }
 0x527   :  { %2401 = vtanh.f32 %v1086_v39 }
 0x528   :  { %2403 = vtanh.f32 %v1080_v23  ;;  %v3545_v23 = vld [vmem:[#allocation30_spill] sm:$0xff] }
 0x529   :  { %2405 = vtanh.f32 %v1091_v40 }
 0x530   :  { %v2400_v41 = vpop.eup %2399 }
 0x531   :  { %v2402_v53 = vpop.eup %2401  ;;  %v1084_v63 = vadd.f32 1.0, %v2400_v41 }
 0x532   :  { %v1088_v0 = vadd.f32 1.0, %v2402_v53  ;;  %v2404_v54 = vpop.eup %2403 }
 0x533   :  { %v1085_v1 = vmul.f32 0.5, %v1084_v63  ;;  %v2406_v32 = vpop.eup %2405 }
 0x534   :  { %v1089_v56 = vmul.f32 0.5, %v1088_v0  ;;  %v1093_v9 = vadd.f32 1.0, %v2406_v32 }
 0x535   :  { %v1096_v3 = vmul.f32 %v2404_v54, %v1085_v1 }
 0x536   :  { %v1095_v4 = vmul.f32 %v1089_v56, %v3122_v21  ;;  %v1094_v58 = vmul.f32 0.5, %v1093_v9  ;;  %v3203_v21 = vld [vmem:[#allocation4 + $0x64] ss:$16 sps:$4 sm:$0xff]  }
 0x538   :  { %v3168_v7 = vadd.f32 %v1096_v3, %v1095_v4 }
 0x53a   :  { %2407 = vtanh.f32 %v3168_v7 }
 0x544   :  { %v2408_v6 = vpop.eup %2407 }
 0x545   :  { %v1099_v31 = vmul.f32 %v2408_v6, %v1094_v58  ;;  %v2499_v58 = vld [vmem:[#allocation4 + $0xc8] ss:$16 sps:$4 sm:$0xff]   ;;  %v2500_v6 = vld [vmem:[#allocation4 + $0xc0] ss:$16 sps:$4 sm:$0xff]  }
 0x547   :  { %v1100_v11 = vpack.c.bf16 %v1099_v31, %v1099_v31  ;;  %v2501_v31 = vld [vmem:[#allocation4 + $0xec] ss:$16 sps:$4 sm:$0xff]  }
 0x549   :  { %1101 = vst [vmem:[#allocation3 + $0x10] sm:$0xf] %v1100_v11  ;;  %1139 = vmatmul.mubr.bf16.vlgmr.msra.gmra.mrb[36].mxu0 %v1100_v11  ;;  %1180 = vmatmul.mubr.bf16.vlgmr.msra.gmra.mrb[36].mxu1 %v1100_v11  ;;  %v2502_v11 = vld [vmem:[#allocation4 + $0xe4] ss:$16 sps:$4 sm:$0xff]  }
 0x54a   :  { %1220 = vmatpush1.bf16.msra.mxu0 %v3171_v13  ;;  %1261 = vmatpush1.bf16.msra.mxu1 %v3174_v12 }
 0x54b   :  { %1221 = vmatprep.subr.bf16.mxu0 %v3177_v35  ;;  %1262 = vmatprep.subr.bf16.mxu1 %v3180_v10 }
 0x54c   :  { %1251 = vmatprep.mubr.bf16.mxu0 %v3535_v55  ;;  %1292 = vmatprep.mubr.bf16.mxu1 %v3535_v55 }
 0x54e   :  { %1222 = vmatpush1.bf16.msra.mxu0 %v3185_v20  ;;  %1263 = vmatpush1.bf16.msra.mxu1 %v3188_v43 }
 0x54f   :  { %1223 = vmatprep.subr.bf16.mxu0 %v3191_v24  ;;  %1264 = vmatprep.subr.bf16.mxu1 %v3194_v8 }
 0x552   :  { %1224 = vmatpush1.bf16.msra.mxu0 %v3197_v57  ;;  %1265 = vmatpush1.bf16.msra.mxu1 %v3200_v5 }
 0x553   :  { %1225 = vmatprep.subr.bf16.mxu0 %v3203_v21  ;;  %1266 = vmatprep.subr.bf16.mxu1 %v3206_v2 }
 0x556   :  { %1226 = vmatpush1.bf16.msra.mxu0 %v3209_v59  ;;  %1267 = vmatpush1.bf16.msra.mxu1 %v3212_v42 }
 0x557   :  { %1227 = vmatprep.subr.bf16.mxu0 %v3215_v48  ;;  %1268 = vmatprep.subr.bf16.mxu1 %v3218_v61 }
 0x55a   :  { %1228 = vmatpush1.bf16.msra.mxu0 %v3221_v60  ;;  %1269 = vmatpush1.bf16.msra.mxu1 %v3224_v62 }
 0x55b   :  { %1229 = vmatprep.subr.bf16.mxu0 %v3227_v16  ;;  %1270 = vmatprep.subr.bf16.mxu1 %v3230_v17 }
 0x55e   :  { %1230 = vmatpush1.bf16.msra.mxu0 %v3233_v18  ;;  %1271 = vmatpush1.bf16.msra.mxu1 %v3236_v19 }
 0x55f   :  { %1231 = vmatprep.subr.bf16.mxu0 %v2822_v44  ;;  %1272 = vmatprep.subr.bf16.mxu1 %v2824_v45 }
 0x562   :  { %1232 = vmatpush1.bf16.msra.mxu0 %v2828_v46  ;;  %1273 = vmatpush1.bf16.msra.mxu1 %v2830_v47 }
 0x563   :  { %1233 = vmatprep.subr.bf16.mxu0 %v2832_v49  ;;  %1274 = vmatprep.subr.bf16.mxu1 %v2834_v50 }
 0x566   :  { %1234 = vmatpush1.bf16.msra.mxu0 %v2844_v51  ;;  %1275 = vmatpush1.bf16.msra.mxu1 %v2846_v52 }
 0x567   :  { %1370 = vmatprep.subr.bf16.mxu1 %v3160_v15  ;;  %1329 = vmatprep.subr.bf16.mxu0 %v3157_v14 }
 0x61c   :  { %v1140_v22 = vpop.f32.mrb[36].mxu0  ;;  %v1181_v44 = vpop.f32.mrb[36].mxu1 }
 0x61d   :  { %v1188_v45 = vadd.f32 %v1140_v22, %v3545_v23  ;;  %v1190_v46 = vadd.f32 %v1181_v44, %v3546_v25  ;;  %v1142_v26 = vpop.f32.mrb[37].mxu0  ;;  %v1183_v47 = vpop.f32.mrb[37].mxu1 }
 0x61e   :  { %v1189_v49 = vadd.f32 %v1142_v26, %v3547_v27  ;;  %v1191_v50 = vadd.f32 %v1183_v47, %v3548_v28  ;;  %v1144_v29 = vpop.f32.mrb[38].mxu0  ;;  %v1185_v51 = vpop.f32.mrb[38].mxu1 }
 0x61f   :  { %v1192_v30 = vmul.f32 0.5, %v1188_v45  ;;  %v1145_v52 = vpop.f32.mrb[39].mxu0  ;;  %v1186_v33 = vpop.f32.mrb[39].mxu1 }
 0x620   :  { %v1196_v15 = vmul.f32 0.5, %v1189_v49  ;;  %v1201_v14 = vmul.f32 0.5, %v1191_v50  ;;  %v1440_v33 = vld [vmem:[%s3490_s6] sm:$0x3] }
 0x621   :  { %2409 = vtanh.f32 %v1192_v30 }
 0x622   :  { %2411 = vtanh.f32 %v1196_v15 }
 0x623   :  { %2413 = vtanh.f32 %v1190_v46 }
 0x624   :  { %2415 = vtanh.f32 %v1201_v14  ;;  %v2352_v14 = vld [vmem:[#allocation8 + $0x8] sm:$0xff]  }
 0x62b   :  { %v2410_v34 = vpop.eup %2409 }
 0x62c   :  { %v2412_v36 = vpop.eup %2411  ;;  %v1194_v37 = vadd.f32 1.0, %v2410_v34  ;;  %v1447_v34 = vsel %vm1445_vm1, %v1440_v33, 0 }
 0x62d   :  { %v1198_v38 = vadd.f32 1.0, %v2412_v36  ;;  %v2414_v40 = vpop.eup %2413  ;;  %v1489_v36 = vld [vmem:[#allocation3] sm:$0xff] }
 0x62e   :  { %v1195_v39 = vmul.f32 0.5, %v1194_v37  ;;  %v2416_v1 = vpop.eup %2415  ;;  %v1438_v37 = vld [vmem:[%s3485_s1] sm:$0xff] }
 0x62f   :  { %v1199_v41 = vmul.f32 0.5, %v1198_v38  ;;  %v1203_v54 = vadd.f32 1.0, %v2416_v1  ;;  %v2353_v38 = vld [vmem:[#allocation8 + $0x10] sm:$0xff]   ;;  %v1490_v1 = vld [vmem:[#allocation3 + $0x8] sm:$0xff] }
 0x630   :  { %v1206_v53 = vmul.f32 %v2414_v40, %v1195_v39  ;;  %v1439_v39 = vpack.c.bf16 %v1438_v37, %v1438_v37  ;;  %v2354_v40 = vld [vmem:[#allocation8 + $0x18] sm:$0xff]  }
 0x631   :  { %v1205_v63 = vmul.f32 %v1199_v41, %v3168_v7  ;;  %v1204_v56 = vmul.f32 0.5, %v1203_v54  ;;  %v2498_v7 = vld [vmem:[#allocation4 + $0xc4] ss:$16 sps:$4 sm:$0xff]  }
 0x632   :  { %v2355_v41 = vld [vmem:[#allocation8 + $0x20] sm:$0xff]  }
 0x633   :  { %v3254_v0 = vadd.f32 %v1206_v53, %v1205_v63  ;;  %v2356_v53 = vld [vmem:[#allocation8 + $0x28] sm:$0xff]   ;;  %v2357_v63 = vld [vmem:[#allocation8 + $0x30] sm:$0xff]  }
 0x635   :  { %2417 = vtanh.f32 %v3254_v0 }
 0x63f   :  { %v2418_v3 = vpop.eup %2417 }
 0x640   :  { %v1209_v4 = vmul.f32 %v2418_v3, %v1204_v56 }
 0x642   :  { %v1210_v32 = vpack.c.bf16 %v1209_v4, %v1209_v4  ;;  %v3553_v4 = vld [vmem:[#allocation38_spill] sm:$0xff] }
 0x644   :  { %v1212_v9 = vrot.slane %v1210_v32, 4  ;;  %1252 = vmatmul.mubr.bf16.vlgmr.msra.gmra.mrb[40].mxu0 %v1210_v32  ;;  %1293 = vmatmul.mubr.bf16.vlgmr.msra.gmra.mrb[40].mxu1 %v1210_v32 }
 0x645   :  { %1371 = vmatpush1.bf16.msra.mxu1 %v3174_v12  ;;  %1330 = vmatpush1.bf16.msra.mxu0 %v3171_v13  ;;  %v2503_v13 = vld [vmem:[#allocation4 + $0xe8] ss:$16 sps:$4 sm:$0xff]   ;;  %v2504_v12 = vld [vmem:[#allocation4 + $0xe0] ss:$16 sps:$4 sm:$0xff]  }
 0x646   :  { %1214 = vst [vmem:[#allocation3 + $0x10] sm:$0xf0] %v1212_v9  ;;  %1372 = vmatprep.subr.bf16.mxu1 %v3180_v10  ;;  %1331 = vmatprep.subr.bf16.mxu0 %v3177_v35  ;;  %v2351_v35 = vld [vmem:[#allocation8] sm:$0xff]   ;;  %v2599_v10 = vmov 0.0  }
 0x647   :  { %1361 = vmatprep.mubr.bf16.mxu0 %v3535_v55  ;;  %1402 = vmatprep.mubr.bf16.mxu1 %v3535_v55  ;;  %v2497_v55 = vld [vmem:[#allocation4 + $0xcc] ss:$16 sps:$4 sm:$0xff]   ;;  %v3554_v9 = vld [vmem:[#allocation39_spill] sm:$0xff] }
 0x649   :  { %1373 = vmatpush1.bf16.msra.mxu1 %v3188_v43  ;;  %1332 = vmatpush1.bf16.msra.mxu0 %v3185_v20 }
 0x64a   :  { %1374 = vmatprep.subr.bf16.mxu1 %v3194_v8  ;;  %1333 = vmatprep.subr.bf16.mxu0 %v3191_v24  ;;  %v3549_v24 = vld [vmem:[#allocation34_spill] sm:$0xff] }
 0x64d   :  { %1375 = vmatpush1.bf16.msra.mxu1 %v3200_v5  ;;  %1334 = vmatpush1.bf16.msra.mxu0 %v3197_v57  ;;  %v3550_v57 = vld [vmem:[#allocation35_spill] sm:$0xff]  ;;  %v1491_v54 = vld [vmem:[#allocation3 + $0x10] sm:$0xff] }
 0x64e   :  { %1376 = vmatprep.subr.bf16.mxu1 %v3206_v2  ;;  %1335 = vmatprep.subr.bf16.mxu0 %v3203_v21 }
 0x651   :  { %1377 = vmatpush1.bf16.msra.mxu1 %v3212_v42  ;;  %1336 = vmatpush1.bf16.msra.mxu0 %v3209_v59  ;;  %v3551_v59 = vld [vmem:[#allocation36_spill] sm:$0xff] }
 0x652   :  { %1378 = vmatprep.subr.bf16.mxu1 %v3218_v61  ;;  %1337 = vmatprep.subr.bf16.mxu0 %v3215_v48  ;;  %v3552_v48 = vld [vmem:[#allocation37_spill] sm:$0xff] }
 0x655   :  { %1379 = vmatpush1.bf16.msra.mxu1 %v3224_v62  ;;  %1338 = vmatpush1.bf16.msra.mxu0 %v3221_v60 }
 0x656   :  { %1380 = vmatprep.subr.bf16.mxu1 %v3230_v17  ;;  %1339 = vmatprep.subr.bf16.mxu0 %v3227_v16 }
 0x659   :  { %1381 = vmatpush1.bf16.msra.mxu1 %v3236_v19  ;;  %1340 = vmatpush1.bf16.msra.mxu0 %v3233_v18 }
 0x65a   :  { %1382 = vmatprep.subr.bf16.mxu1 %v2497_v55  ;;  %1341 = vmatprep.subr.bf16.mxu0 %v2498_v7 }
 0x65d   :  { %1383 = vmatpush1.bf16.msra.mxu1 %v2499_v58  ;;  %1342 = vmatpush1.bf16.msra.mxu0 %v2500_v6  ;;  %v2601_v6 = vmov 1966171168  }
 0x65e   :  { %1384 = vmatprep.subr.bf16.mxu1 %v2501_v31  ;;  %1343 = vmatprep.subr.bf16.mxu0 %v2502_v11  ;;  %v1632_v31 = vunpack.c.l.s4 %v2601_v6  ;;  %v3555_v11 = vld [vmem:[#allocation40_spill] sm:$0xff] }
 0x661   :  { %1385 = vmatpush1.bf16.msra.mxu1 %v2503_v13  ;;  %1344 = vmatpush1.bf16.msra.mxu0 %v2504_v12  ;;  %v3556_v12 = vld [vmem:[#allocation41_spill] sm:$0xff] }
 0x662   :  { %2253 = vmatprep.subr.bf16.mxu1 %v2351_v35  ;;  %2247 = vmatprep.subr.bf16.mxu0 %v2599_v10 }
 0x717   :  { %v1253_v20 = vpop.f32.mrb[40].mxu0  ;;  %v1294_v43 = vpop.f32.mrb[40].mxu1 }
 0x718   :  { %v1301_v8 = vadd.f32 %v1253_v20, %v3549_v24  ;;  %v1303_v5 = vadd.f32 %v1294_v43, %v3550_v57  ;;  %v1255_v21 = vpop.f32.mrb[41].mxu0  ;;  %v1296_v2 = vpop.f32.mrb[41].mxu1 }
 0x719   :  { %v1302_v42 = vadd.f32 %v1255_v21, %v3551_v59  ;;  %v1304_v61 = vadd.f32 %v1296_v2, %v3552_v48  ;;  %v1257_v60 = vpop.f32.mrb[42].mxu0  ;;  %v1298_v62 = vpop.f32.mrb[42].mxu1  ;;  %v3557_v59 = vld [vmem:[#allocation16_spill] sm:$0xff] }
 0x71a   :  { %v1305_v16 = vmul.f32 0.5, %v1301_v8  ;;  %v1258_v17 = vpop.f32.mrb[43].mxu0  ;;  %v1299_v18 = vpop.f32.mrb[43].mxu1 }
 0x71b   :  { %v1309_v19 = vmul.f32 0.5, %v1302_v42  ;;  %v1314_v22 = vmul.f32 0.5, %v1304_v61 }
 0x71c   :  { %2419 = vtanh.f32 %v1305_v16 }
 0x71d   :  { %2421 = vtanh.f32 %v1309_v19 }
 0x71e   :  { %2423 = vtanh.f32 %v1303_v5  ;;  %v1633_v5 = vunpack.c.0.s8 %v1632_v31 }
 0x71f   :  { %2425 = vtanh.f32 %v1314_v22 }
 0x720   :  { %v1636_v42 = vsub.s32 %v1633_v5, %v3557_v59 }
 0x726   :  { %v2420_v44 = vpop.eup %2419 }
 0x727   :  { %v2422_v23 = vpop.eup %2421  ;;  %v1307_v45 = vadd.f32 1.0, %v2420_v44 }
 0x728   :  { %v1311_v25 = vadd.f32 1.0, %v2422_v23  ;;  %v2424_v26 = vpop.eup %2423 }
 0x729   :  { %v1308_v46 = vmul.f32 0.5, %v1307_v45  ;;  %v2426_v50 = vpop.eup %2425 }
 0x72a   :  { %v1312_v47 = vmul.f32 0.5, %v1311_v25  ;;  %v1316_v29 = vadd.f32 1.0, %v2426_v50 }
 0x72b   :  { %v1319_v27 = vmul.f32 %v2424_v26, %v1308_v46 }
 0x72c   :  { %v1318_v49 = vmul.f32 %v1312_v47, %v3254_v0  ;;  %v1317_v51 = vmul.f32 0.5, %v1316_v29  ;;  %v2358_v0 = vld [vmem:[#allocation8 + $0x38] sm:$0xff]  }
 0x72e   :  { %v3286_v28 = vadd.f32 %v1319_v27, %v1318_v49 }
 0x730   :  { %2427 = vtanh.f32 %v3286_v28 }
 0x73a   :  { %v2428_v30 = vpop.eup %2427 }
 0x73b   :  { %v1322_v52 = vmul.f32 %v2428_v30, %v1317_v51 }
 0x73d   :  { %v1323_v15 = vpack.c.bf16 %v1322_v52, %v1322_v52 }
 0x73f   :  { %1324 = vst [vmem:[#allocation3 + $0x18] sm:$0xf] %v1323_v15  ;;  %1362 = vmatmul.mubr.bf16.vlgmr.msra.gmra.mrb[44].mxu0 %v1323_v15  ;;  %1403 = vmatmul.mubr.bf16.vlgmr.msra.gmra.mrb[44].mxu1 %v1323_v15 }
 0x740   :  { %2254 = vmatpush3.bf16.msra.mxu1 %v2351_v35  ;;  %2269 = vmatprep.mubr.bf16.mxu1 %v1489_v36  ;;  %v3558_v36 = vld [vmem:[#allocation19_spill] sm:$0xff] }
 0x741   :  { %2255 = vmatprep.subr.bf16.mxu1 %v2352_v14  ;;  %2248 = vmatpush3.bf16.msra.mxu0 %v1447_v34  ;;  %v2221_v34 = vld [vmem:[%s3491_s7] ss:$0 sm:$0xff]  ;;  %s1758_s7 = sld [smem:[#allocation10]] }
 0x742   :  { %2249 = vmatprep.mubr.msk.bf16.mxu0 %vm2600_vm2, %v2599_v10 }
 0x744   :  { %2256 = vmatpush3.bf16.msra.mxu1 %v2352_v14 }
 0x745   :  { %2257 = vmatprep.subr.bf16.mxu1 %v2353_v38 }
 0x747   :  { %2250 = vmatmul.mubr.msk.bf16.vlgmr.msra.gmra.mrb[48].mxu0 %vm1441_vm3, %v1439_v39 }
 0x748   :  { %2258 = vmatpush3.bf16.msra.mxu1 %v2353_v38 }
 0x749   :  { %2259 = vmatprep.subr.bf16.mxu1 %v2354_v40 }
 0x74c   :  { %2260 = vmatpush3.bf16.msra.mxu1 %v2354_v40 }
 0x74d   :  { %2261 = vmatprep.subr.bf16.mxu1 %v2355_v41 }
 0x750   :  { %2262 = vmatpush3.bf16.msra.mxu1 %v2355_v41 }
 0x751   :  { %2263 = vmatprep.subr.bf16.mxu1 %v2356_v53 }
 0x754   :  { %2264 = vmatpush3.bf16.msra.mxu1 %v2356_v53 }
 0x755   :  { %2265 = vmatprep.subr.bf16.mxu1 %v2357_v63 }
 0x758   :  { %2266 = vmatpush3.bf16.msra.mxu1 %v2357_v63 }
 0x759   :  { %2267 = vmatprep.subr.bf16.mxu1 %v2358_v0 }
 0x75c   :  { %2268 = vmatpush3.bf16.msra.mxu1 %v2358_v0 }
 0x75f   :  { %2270 = vmatmul.mubr.bf16.vlgmr.msra.gmra.mrb[48].mxu1 %v1490_v1 }
 0x760   :  { %2273 = vmatprep.mubr.bf16.mxu1 %v1491_v54  ;;  %v2230_v54 = vld [vmem:[%s3492_s8] ss:$0 sm:$0xff] }
 0x812   :  { %v1363_v56 = vpop.f32.mrb[44].mxu0  ;;  %v1404_v3 = vpop.f32.mrb[44].mxu1 }
 0x813   :  { %v1411_v32 = vadd.f32 %v1363_v56, %v3553_v4  ;;  %v1413_v55 = vadd.f32 %v1404_v3, %v3554_v9  ;;  %v1365_v7 = vpop.f32.mrb[45].mxu0  ;;  %v1406_v58 = vpop.f32.mrb[45].mxu1 }
 0x814   :  { %v1412_v13 = vadd.f32 %v1365_v7, %v3555_v11  ;;  %v1414_v35 = vadd.f32 %v1406_v58, %v3556_v12  ;;  %v1367_v10 = vpop.f32.mrb[46].mxu0  ;;  %v1408_v20 = vpop.f32.mrb[46].mxu1 }
 0x815   :  { %v1415_v43 = vmul.f32 0.5, %v1411_v32  ;;  %v1368_v24 = vpop.f32.mrb[47].mxu0  ;;  %v1409_v8 = vpop.f32.mrb[47].mxu1 }
 0x816   :  { %v1419_v57 = vmul.f32 0.5, %v1412_v13  ;;  %v1424_v16 = vmul.f32 0.5, %v1414_v35 }
 0x817   :  { %2429 = vtanh.f32 %v1415_v43 }
 0x818   :  { %2431 = vtanh.f32 %v1419_v57 }
 0x819   :  { %2433 = vtanh.f32 %v1413_v55 }
 0x81a   :  { %v1483_v21 = vpop.f32.mrb[48].mxu0  ;;  %2435 = vtanh.f32 %v1424_v16 }
 0x81b   :  { %v1630_v2 = vcombine.high %v1483_v21, %v1483_v21  ;;  %v2251_v48 = vpop.f32.mrb[49].mxu0  ;;  %v1637_v25 = vrot.slane %v1483_v21, %v1636_v42 }
 0x81c   :  { %v1486_v61 = vpop.f32.mrb[50].mxu0 }
 0x81d   :  { %v1644_v60 = vrot.slane %v1630_v2, %v1636_v42  ;;  %v2252_v62 = vpop.f32.mrb[51].mxu0  ;;  %v1645_v50 = vcombine.high %v1637_v25, %v1637_v25  ;;  %v1653_v51 = vrot.slane %v1637_v25, %v1636_v42 }
 0x81f   :  { %v1646_v17 = vcombine.high %v1644_v60, %v1644_v60  ;;  %v3300_v18 = vrot.slane %v1644_v60, %v1636_v42  ;;  %v1667_v30 = vrot.slane %v1645_v50, %v1636_v42  ;;  %v1675_v33 = vcombine.high %v1653_v51, %v1653_v51 }
 0x820   :  { %v1682_v39 = vrot.slane %v1653_v51, %v3558_v36  ;;  %v1759_v50 = vstv %s1758_s7 }
 0x821   :  { %v2430_v19 = vpop.eup %2429  ;;  %v3302_v22 = vrot.slane %v1646_v17, %v1636_v42  ;;  %v1677_v15 = vcombine.high %v1667_v30, %v1667_v30  ;;  %v1690_v37 = vrot.slane %v1675_v33, %v3558_v36  ;;  %v1686_v1 = vrot.slane %v1667_v30, %v3558_v36 }
 0x822   :  { %v2432_v44 = vpop.eup %2431  ;;  %v1417_v23 = vadd.f32 1.0, %v2430_v19  ;;  %v1676_v43 = vcombine.high %v3300_v18, %v3300_v18  ;;  %v1698_v42 = vrot.slane %v3300_v18, %v3558_v36 }
 0x823   :  { %v1421_v45 = vadd.f32 1.0, %v2432_v44  ;;  %v2434_v26 = vpop.eup %2433  ;;  %v1694_v41 = vrot.slane %v1677_v15, %v3558_v36  ;;  %v1678_v24 = vcombine.high %v3302_v22, %v3302_v22  ;;  %v1702_v44 = vrot.slane %v3302_v22, %v3558_v36 }
 0x824   :  { %v1418_v46 = vmul.f32 0.5, %v1417_v23  ;;  %v2436_v52 = vpop.eup %2435  ;;  %v1706_v5 = vrot.slane %v1676_v43, %v3558_v36  ;;  %v3559_v22 = vlaneseq }
 0x825   :  { %v1422_v47 = vmul.f32 0.5, %v1421_v45  ;;  %v1426_v14 = vadd.f32 1.0, %v2436_v52  ;;  %v1710_v62 = vrot.slane %v1678_v24, %v3558_v36 }
 0x826   :  { %v1429_v27 = vmul.f32 %v2434_v26, %v1418_v46 }
 0x827   :  { %v1428_v49 = vmul.f32 %v1422_v47, %v3286_v28  ;;  %v1427_v53 = vmul.f32 0.5, %v1426_v14 }
 0x829   :  { %v1430_v29 = vadd.f32 %v1429_v27, %v1428_v49  ;;  %v1818_v49 = vand.u32 127, %v3559_v22 }
 0x82b   :  { %2437 = vtanh.f32 %v1430_v29  ;;  %v3351_v30 = vsub.s32 %v1818_v49, %v3557_v59 }
 0x832   :  { %v2271_v38 = vpop.f32.mrb[48].mxu1 }
 0x833   :  { %v1607_v40 = vadd.f32 %v2271_v38, %v2221_v34  ;;  %v1598_v28 = vpop.f32.mrb[49].mxu1 }
 0x834   :  { %v1599_v63 = vadd.f32 %v2221_v34, %v1598_v28  ;;  %v2272_v0 = vpop.f32.mrb[50].mxu1 }
 0x835   :  { %v2438_v56 = vpop.eup %2437  ;;  %v1610_v3 = vadd.f32 %v2272_v0, %v2221_v34  ;;  %v1601_v4 = vpop.f32.mrb[51].mxu1  ;;  %v3315_v32 = vadd.f32 %v1690_v37, %v1607_v40 }
 0x836   :  { %v1432_v9 = vmul.f32 %v2438_v56, %v1427_v53  ;;  %v1602_v55 = vadd.f32 %v2221_v34, %v1601_v4  ;;  %v3317_v7 = vadd.f32 %v1682_v39, %v1599_v63 }
 0x837   :  { %v3319_v58 = vadd.f32 %v1694_v41, %v1610_v3  ;;  %v1736_v6 = vmul.f32 %v2230_v54, %v3315_v32 }
 0x838   :  { %v1433_v31 = vpack.c.bf16 %v1432_v9, %v1432_v9  ;;  %v3322_v11 = vadd.f32 %v1686_v1, %v1602_v55  ;;  %v1734_v13 = vmul.f32 %v2230_v54, %v3317_v7 }
 0x839   :  { %1746 = vadd.xlane.f32.xlu1 %v1736_v6  ;;  %v1737_v35 = vmul.f32 %v2230_v54, %v3319_v58 }
 0x83a   :  { %v1435_v12 = vrot.slane %v1433_v31, 4  ;;  %1742 = vadd.xlane.f32.xlu0 %v1734_v13  ;;  %v1735_v10 = vmul.f32 %v2230_v54, %v3322_v11 }
 0x83c   :  { %1437 = vst [vmem:[#allocation3 + $0x18] sm:$0xf0] %v1435_v12 }
 0x83d   :  { %1748 = vadd.xlane.f32.xlu1 %v1737_v35 }
 0x83e   :  { %1744 = vadd.xlane.f32.xlu0 %v1735_v10 }
 0x843   :  { %v1492_v20 = vld [vmem:[#allocation3 + $0x18] sm:$0xff] }
 0x844   :  { %2274 = vmatmul.mubr.bf16.gmra.mrb[52].mxu1 %v1492_v20 }
 0x8c6   :  { %v1747_v29 = vpop.xlane.xlu1 %1746 }
 0x8c7   :  { %v1743_v47 = vpop.xlane.xlu0 %1742  ;;  %v1762_v15 = vadd.f32 %v1759_v50, %v1747_v29 }
 0x8c8   :  { %v1760_v52 = vadd.f32 %v1759_v50, %v1743_v47  ;;  %v1897_v47 = vsub.s32 6, %v3557_v59 }
 0x8c9   :  { %v1830_v39 = vrot.slane %v1762_v15, %v3351_v30 }
 0x8ca   :  { %v1749_v14 = vpop.xlane.xlu1 %1748 }
 0x8cb   :  { %v1745_v27 = vpop.xlane.xlu0 %1744  ;;  %v1763_v37 = vadd.f32 %v1759_v50, %v1749_v14 }
 0x8cc   :  { %v1761_v51 = vadd.f32 %v1759_v50, %v1745_v27 }
 0x8cd   :  { %v1834_v53 = vrot.slane %v1763_v37, %v3351_v30 }
 0x8ce   :  { %v1826_v33 = vrot.slane %v1761_v51, %v3351_v30 }
 0x917   :  { %v2275_v8 = vpop.f32.mrb[52].mxu1 }
 0x918   :  { %v1623_v57 = vadd.f32 %v2275_v8, %v2221_v34  ;;  %v1614_v21 = vpop.f32.mrb[53].mxu1  ;;  %v3560_v8 = vld [vmem:[#allocation20_spill] sm:$0xff] }
 0x919   :  { %v1615_v2 = vadd.f32 %v2221_v34, %v1614_v21  ;;  %v2276_v48 = vpop.f32.mrb[54].mxu1 }
 0x91a   :  { %v3334_v61 = vadd.f32 %v1706_v5, %v1623_v57  ;;  %v1626_v60 = vadd.f32 %v2276_v48, %v2221_v34  ;;  %v1617_v16 = vpop.f32.mrb[55].mxu1  ;;  %v3561_v5 = vld [vmem:[#allocation17_spill] sm:$0xff] }
 0x91b   :  { %v3337_v17 = vadd.f32 %v1698_v42, %v1615_v2  ;;  %v1618_v19 = vadd.f32 %v2221_v34, %v1617_v16  ;;  %v1822_v34 = vrot.slane %v1760_v52, %v3351_v30  ;;  %v1889_v2 = vsub.s32 4, %v3557_v59  ;;  %v3562_v42 = vld [vmem:[#allocation18_spill] sm:$0xff] }
 0x91c   :  { %v3341_v23 = vadd.f32 %v1710_v62, %v1626_v60  ;;  %v1740_v46 = vmul.f32 %v2230_v54, %v3334_v61 }
 0x91d   :  { %v3343_v45 = vadd.f32 %v1702_v44, %v1618_v19  ;;  %v1738_v25 = vmul.f32 %v2230_v54, %v3337_v17  ;;  %v1852_v38 = vsel %vm1851_vm4, %v1826_v33, %v1822_v34 }
 0x91e   :  { %v1741_v26 = vmul.f32 %v2230_v54, %v3341_v23  ;;  %v1854_v28 = vsel %vm1853_vm5, %v1830_v39, %v1852_v38 }
 0x91f   :  { %1750 = vadd.xlane.f32.xlu0 %v1738_v25  ;;  %v1739_v18 = vmul.f32 %v2230_v54, %v3343_v45  ;;  %v1856_v54 = vsel %vm1855_vm6, %v1834_v53, %v1854_v28  ;;  %v1893_v25 = vsub.s32 5, %v3557_v59 }
 0x921   :  { %1752 = vadd.xlane.f32.xlu1 %v1739_v18 }
 0x923   :  { %1754 = vadd.xlane.f32.xlu0 %v1740_v46 }
 0x925   :  { %1756 = vadd.xlane.f32.xlu1 %v1741_v26 }
 0x9ac   :  { %v1751_v40 = vpop.xlane.xlu0 %1750 }
 0x9ad   :  { %v1764_v41 = vadd.f32 %v1759_v50, %v1751_v40 }
 0x9ae   :  { %v1753_v63 = vpop.xlane.xlu1 %1752 }
 0x9af   :  { %v1838_v0 = vrot.slane %v1764_v41, %v3351_v30  ;;  %v1765_v1 = vadd.f32 %v1759_v50, %v1753_v63 }
 0x9b0   :  { %v1755_v56 = vpop.xlane.xlu0 %1754 }
 0x9b1   :  { %v1858_v3 = vsel %vm1857_vm7, %v1838_v0, %v1856_v54  ;;  %v1842_v4 = vrot.slane %v1765_v1, %v3351_v30  ;;  %v1766_v9 = vadd.f32 %v1759_v50, %v1755_v56  ;;  %v2231_v54 = vld [vmem:[%s3493_s9] ss:$0 sm:$0xff]  ;;  %s2232_s9 = sld [smem:[#allocation10 + $0x1]] }
 0x9b2   :  { %v1757_v55 = vpop.xlane.xlu1 %1756  ;;  %v1775_v56 = vmul.f32 %v2231_v54, %v3317_v7 }
 0x9b3   :  { %v1846_v6 = vrot.slane %v1766_v9, %v3351_v30  ;;  %v1767_v31 = vadd.f32 %v1759_v50, %v1757_v55  ;;  %v1860_v13 = vsel %vm1859_vm8, %v1842_v4, %v1858_v3  ;;  %v1901_v50 = vsub.s32 7, %v3557_v59 }
 0x9b4   :  { %v1777_v3 = vmul.f32 %v2231_v54, %v3315_v32  ;;  %v1779_v4 = vmul.f32 %v2231_v54, %v3337_v17 }
 0x9b5   :  { %v1850_v12 = vrot.slane %v1767_v31, %v3351_v30  ;;  %v1862_v35 = vsel %vm1861_vm9, %v1846_v6, %v1860_v13 }
 0x9b7   :  { %v1864_v10 = vsel %vm1863_vm10, %v1850_v12, %v1862_v35 }
 0x9b8   :  { %v1867_v20 = vsel %vm1866_vm11, %v1864_v10, -inf }
 0x9b9   :  { %1868 = vmax.xlane.f32.xlu0 %v1867_v20 }
 0xa46   :  { %v1869_v43 = vpop.xlane.xlu0 %1868 }
 0xa47   :  { %v1874_v24 = vrot.slane %v1869_v43, %v3558_v36  ;;  %v1878_v57 = vrot.slane %v1869_v43, %v3560_v8  ;;  %v1882_v21 = vrot.slane %v1869_v43, %v3561_v5  ;;  %v1886_v48 = vrot.slane %v1869_v43, %v3562_v42 }
 0xa48   :  { %v1890_v18 = vrot.slane %v1869_v43, %v1889_v2  ;;  %v1894_v27 = vrot.slane %v1869_v43, %v1893_v25  ;;  %v1898_v29 = vrot.slane %v1869_v43, %v1897_v47  ;;  %v1902_v14 = vrot.slane %v1869_v43, %v1901_v50 }
 0xa49   :  { %v1911_v60 = vsub.f32 %v1760_v52, %v1874_v24  ;;  %v1912_v62 = vsub.f32 %v1761_v51, %v1878_v57  ;;  %v1913_v16 = vsub.f32 %v1762_v15, %v1882_v21  ;;  %v1914_v46 = vsub.f32 %v1763_v37, %v1886_v48 }
 0xa4a   :  { %v1915_v22 = vsub.f32 %v1764_v41, %v1890_v18  ;;  %v1916_v51 = vsub.f32 %v1765_v1, %v1894_v27  ;;  %v1917_v34 = vsub.f32 %v1766_v9, %v1898_v29  ;;  %v1918_v39 = vsub.f32 %v1767_v31, %v1902_v14 }
 0xa4b   :  { %v1919_v19 = vmul.f32 1.442695, %v1911_v60  ;;  %v1921_v44 = vmul.f32 1.442695, %v1912_v62  ;;  %v1923_v26 = vmul.f32 1.442695, %v1913_v16  ;;  %v1781_v9 = vmul.f32 %v2231_v54, %v3334_v61 }
 0xa4c   :  { %v1925_v49 = vmul.f32 1.442695, %v1914_v46  ;;  %v1927_v52 = vmul.f32 1.442695, %v1915_v22  ;;  %v1929_v37 = vmul.f32 1.442695, %v1916_v51  ;;  %v1778_v27 = vmul.f32 %v2231_v54, %v3319_v58 }
 0xa4d   :  { %2439 = vpow2.f32 %v1919_v19  ;;  %v1931_v40 = vmul.f32 1.442695, %v1917_v34  ;;  %v1933_v41 = vmul.f32 1.442695, %v1918_v39  ;;  %v1780_v22 = vmul.f32 %v2231_v54, %v3343_v45 }
 0xa4e   :  { %2441 = vpow2.f32 %v1921_v44 }
 0xa4f   :  { %2443 = vpow2.f32 %v1923_v26  ;;  %v1776_v26 = vmul.f32 %v2231_v54, %v3322_v11 }
 0xa50   :  { %2445 = vpow2.f32 %v1925_v49  ;;  %v1782_v49 = vmul.f32 %v2231_v54, %v3341_v23 }
 0xa51   :  { %2447 = vpow2.f32 %v1927_v52 }
 0xa52   :  { %2449 = vpow2.f32 %v1929_v37 }
 0xa53   :  { %2451 = vpow2.f32 %v1931_v40 }
 0xa54   :  { %2453 = vpow2.f32 %v1933_v41 }
 0xa57   :  { %v3383_v33 = vpop.eup %2439 }
 0xa58   :  { %v3385_v15 = vpop.eup %2441  ;;  %1944 = vperm.xlu1 %2289, %v3383_v33  }
 0xa59   :  { %1947 = vperm.xlu0 %2290, %v3385_v15   ;;  %v3391_v38 = vpop.eup %2443 }
 0xa5a   :  { %v3394_v28 = vpop.eup %2445 }
 0xa5b   :  { %v3397_v53 = vpop.eup %2447 }
 0xa5c   :  { %1950 = vperm.xlu1 %2289, %v3391_v38   ;;  %v3400_v63 = vpop.eup %2449 }
 0xa5d   :  { %v3403_v0 = vpop.eup %2451 }
 0xa5e   :  { %v3406_v1 = vpop.eup %2453 }
 0xa60   :  { %1953 = vperm.xlu1 %2289, %v3394_v28  }
 0xa64   :  { %1956 = vperm.xlu1 %2289, %v3397_v53  }
 0xa68   :  { %1959 = vperm.xlu1 %2289, %v3400_v63  }
 0xa6c   :  { %1962 = vperm.xlu1 %2289, %v3403_v0  }
 0xa70   :  { %1965 = vperm.xlu1 %2289, %v3406_v1  }
 0xa78   :  { %1783 = vadd.xlane.f32.xlu0 %v1775_v56 }
 0xa7c   :  { %1787 = vadd.xlane.f32.xlu0 %v1777_v3 }
 0xa80   :  { %1791 = vadd.xlane.f32.xlu0 %v1779_v4 }
 0xa84   :  { %1795 = vadd.xlane.f32.xlu0 %v1781_v9 }
 0xad7   :  { %v1945_v55 = vpop.permute.xlu1 %1944 }
 0xad8   :  { %v1948_v12 = vpop.permute.xlu0 %1947  ;;  %v1970_v7 = vrot.slane %v1945_v55, %v3351_v30 }
 0xad9   :  { %v1974_v10 = vrot.slane %v1948_v12, %v3351_v30 }
 0xadb   :  { %v1951_v6 = vpop.permute.xlu1 %1950  ;;  %v1999_v61 = vsel %vm1851_vm4, %v1974_v10, %v1970_v7 }
 0xadc   :  { %v1978_v20 = vrot.slane %v1951_v6, %v3351_v30 }
 0xade   :  { %v2000_v57 = vsel %vm1853_vm5, %v1978_v20, %v1999_v61 }
 0xadf   :  { %v1954_v31 = vpop.permute.xlu1 %1953 }
 0xae0   :  { %v1982_v32 = vrot.slane %v1954_v31, %v3351_v30 }
 0xae2   :  { %v2001_v48 = vsel %vm1855_vm6, %v1982_v32, %v2000_v57 }
 0xae3   :  { %v1957_v13 = vpop.permute.xlu1 %1956 }
 0xae4   :  { %v1986_v17 = vrot.slane %v1957_v13, %v3351_v30 }
 0xae6   :  { %v2002_v60 = vsel %vm1857_vm7, %v1986_v17, %v2001_v48 }
 0xae7   :  { %v1960_v35 = vpop.permute.xlu1 %1959 }
 0xae8   :  { %v1990_v24 = vrot.slane %v1960_v35, %v3351_v30 }
 0xaea   :  { %v2003_v16 = vsel %vm1859_vm8, %v1990_v24, %v2002_v60 }
 0xaeb   :  { %v1963_v43 = vpop.permute.xlu1 %1962 }
 0xaec   :  { %v1994_v21 = vrot.slane %v1963_v43, %v3351_v30 }
 0xaee   :  { %v2004_v44 = vsel %vm1861_vm9, %v1994_v21, %v2003_v16 }
 0xaef   :  { %v1966_v62 = vpop.permute.xlu1 %1965 }
 0xaf0   :  { %v1998_v19 = vrot.slane %v1966_v62, %v3351_v30 }
 0xaf2   :  { %v2005_v18 = vsel %vm1863_vm10, %v1998_v19, %v2004_v44 }
 0xaf3   :  { %v2007_v46 = vsel %vm1866_vm11, %v2005_v18, 0.0 }
 0xaf4   :  { %2008 = vadd.xlane.f32.xlu1 %v2007_v46 }
 0xaf8   :  { %1785 = vadd.xlane.f32.xlu1 %v1776_v26 }
 0xafc   :  { %1789 = vadd.xlane.f32.xlu1 %v1778_v27 }
 0xb00   :  { %1793 = vadd.xlane.f32.xlu1 %v1780_v22 }
 0xb04   :  { %1797 = vadd.xlane.f32.xlu1 %v1782_v49 }
 0xb05   :  { %v1784_v34 = vpop.xlane.xlu0 %1783 }
 0xb81   :  { %v2009_v29 = vpop.xlane.xlu1 %2008 }
 0xb82   :  { %v2018_v51 = vrot.slane %v2009_v29, %v3560_v8  ;;  %v2026_v52 = vrot.slane %v2009_v29, %v3562_v42  ;;  %v2014_v14 = vrot.slane %v2009_v29, %v3558_v36  ;;  %v2022_v11 = vrot.slane %v2009_v29, %v3561_v5  ;;  %v1788_v36 = vpop.xlane.xlu0 %1787 }
 0xb83   :  { %v2030_v58 = vrot.slane %v2009_v29, %v1889_v2  ;;  %v2034_v23 = vrot.slane %v2009_v29, %v1893_v25  ;;  %v2038_v8 = vrot.slane %v2009_v29, %v1897_v47  ;;  %v1800_v42 = vstv %s2232_s9 }
 0xb84   :  { %2455 = vrcp.f32 %v2018_v51  ;;  %v2042_v2 = vrot.slane %v2009_v29, %v1901_v50  ;;  %v1801_v3 = vadd.f32 %v1800_v42, %v1784_v34  ;;  %v1803_v55 = vadd.f32 %v1800_v42, %v1788_v36 }
 0xb85   :  { %2457 = vrcp.f32 %v2026_v52  ;;  %v1786_v45 = vpop.xlane.xlu1 %1785 }
 0xb86   :  { %2459 = vrcp.f32 %v2014_v14  ;;  %v1802_v40 = vadd.f32 %v1800_v42, %v1786_v45  ;;  %v1792_v47 = vpop.xlane.xlu0 %1791 }
 0xb87   :  { %2461 = vrcp.f32 %v2022_v11  ;;  %v1805_v7 = vadd.f32 %v1800_v42, %v1792_v47 }
 0xb88   :  { %2463 = vrcp.f32 %v2030_v58 }
 0xb89   :  { %2465 = vrcp.f32 %v2034_v23  ;;  %v1790_v37 = vpop.xlane.xlu1 %1789 }
 0xb8a   :  { %2467 = vrcp.f32 %v2038_v8  ;;  %v1804_v10 = vadd.f32 %v1800_v42, %v1790_v37  ;;  %v1796_v20 = vpop.xlane.xlu0 %1795 }
 0xb8b   :  { %2469 = vrcp.f32 %v2042_v2  ;;  %v1807_v24 = vadd.f32 %v1800_v42, %v1796_v20 }
 0xb8d   :  { %v1794_v6 = vpop.xlane.xlu1 %1793 }
 0xb8e   :  { %v2456_v5 = vpop.eup %2455  ;;  %v1806_v17 = vadd.f32 %v1800_v42, %v1794_v6 }
 0xb8f   :  { %v2054_v39 = vmul.f32 %v2456_v5, %v3385_v15  ;;  %v2458_v41 = vpop.eup %2457 }
 0xb90   :  { %v2460_v54 = vpop.eup %2459  ;;  %v2058_v59 = vmul.f32 %v2458_v41, %v3394_v28 }
 0xb91   :  { %v2068_v25 = vmul.f32 %v2054_v39, %v1802_v40  ;;  %v2462_v56 = vpop.eup %2461  ;;  %v2052_v4 = vmul.f32 %v2460_v54, %v3383_v33  ;;  %v1798_v43 = vpop.xlane.xlu1 %1797 }
 0xb92   :  { %v2464_v9 = vpop.eup %2463  ;;  %v2056_v31 = vmul.f32 %v2462_v56, %v3391_v38  ;;  %v2070_v33 = vmul.f32 %v2058_v59, %v1804_v10 }
 0xb93   :  { %2087 = vperm.xlu1 %2289, %v2068_v25   ;;  %v2067_v50 = vmul.f32 %v2052_v4, %v1801_v3  ;;  %v2466_v15 = vpop.eup %2465  ;;  %v2060_v12 = vmul.f32 %v2464_v9, %v3397_v53  ;;  %v1808_v53 = vadd.f32 %v1800_v42, %v1798_v43 }
 0xb94   :  { %v2069_v13 = vmul.f32 %v2056_v31, %v1803_v55  ;;  %v2468_v35 = vpop.eup %2467  ;;  %v2062_v32 = vmul.f32 %v2466_v15, %v3400_v63 }
 0xb95   :  { %2084 = vperm.xlu0 %2290, %v2067_v50   ;;  %v2071_v61 = vmul.f32 %v2060_v12, %v1805_v7  ;;  %v2064_v38 = vmul.f32 %v2468_v35, %v3403_v0  ;;  %v2470_v28 = vpop.eup %2469 }
 0xb96   :  { %v2072_v57 = vmul.f32 %v2062_v32, %v1806_v17  ;;  %v2066_v48 = vmul.f32 %v2470_v28, %v3406_v1 }
 0xb97   :  { %2090 = vperm.xlu1 %2289, %v2069_v13   ;;  %v2073_v21 = vmul.f32 %v2064_v38, %v1807_v24 }
 0xb98   :  { %v2074_v60 = vmul.f32 %v2066_v48, %v1808_v53 }
 0xb99   :  { %2093 = vperm.xlu0 %2290, %v2070_v33  }
 0xb9b   :  { %2096 = vperm.xlu1 %2289, %v2071_v61  }
 0xb9d   :  { %2099 = vperm.xlu0 %2290, %v2072_v57  }
 0xb9f   :  { %2102 = vperm.xlu1 %2289, %v2073_v21  }
 0xba1   :  { %2105 = vperm.xlu0 %2290, %v2074_v60  }
 0xc12   :  { %v2088_v62 = vpop.permute.xlu1 %2087 }
 0xc13   :  { %v2114_v63 = vrot.slane %v2088_v62, %v3351_v30 }
 0xc14   :  { %v2085_v16 = vpop.permute.xlu0 %2084 }
 0xc15   :  { %v2110_v19 = vrot.slane %v2085_v16, %v3351_v30 }
 0xc16   :  { %v2091_v0 = vpop.permute.xlu1 %2090 }
 0xc17   :  { %v2118_v44 = vrot.slane %v2091_v0, %v3351_v30  ;;  %v2139_v18 = vsel %vm1851_vm4, %v2114_v63, %v2110_v19 }
 0xc18   :  { %v2094_v46 = vpop.permute.xlu0 %2093 }
 0xc19   :  { %v2140_v26 = vsel %vm1853_vm5, %v2118_v44, %v2139_v18  ;;  %v2122_v1 = vrot.slane %v2094_v46, %v3351_v30 }
 0xc1a   :  { %v2097_v27 = vpop.permute.xlu1 %2096 }
 0xc1b   :  { %v2126_v22 = vrot.slane %v2097_v27, %v3351_v30  ;;  %v2141_v49 = vsel %vm1855_vm6, %v2122_v1, %v2140_v26 }
 0xc1c   :  { %v2100_v29 = vpop.permute.xlu0 %2099 }
 0xc1d   :  { %v2142_v51 = vsel %vm1857_vm7, %v2126_v22, %v2141_v49  ;;  %v2130_v52 = vrot.slane %v2100_v29, %v3351_v30 }
 0xc1e   :  { %v2103_v14 = vpop.permute.xlu1 %2102 }
 0xc1f   :  { %v2134_v11 = vrot.slane %v2103_v14, %v3351_v30  ;;  %v2143_v58 = vsel %vm1859_vm8, %v2130_v52, %v2142_v51 }
 0xc20   :  { %v2106_v34 = vpop.permute.xlu0 %2105 }
 0xc21   :  { %v2144_v45 = vsel %vm1861_vm9, %v2134_v11, %v2143_v58  ;;  %v2138_v23 = vrot.slane %v2106_v34, %v3351_v30 }
 0xc23   :  { %v2145_v8 = vsel %vm1863_vm10, %v2138_v23, %v2144_v45 }
 0xc24   :  { %v2147_v36 = vsel %vm1866_vm11, %v2145_v8, 0.0 }
 0xc25   :  { %2148 = vadd.xlane.f32.xlu1 %v2147_v36 }
 0xcb2   :  { %v2149_v5 = vpop.xlane.xlu1 %2148 }
 0xcb3   :  { %v2150_v42 = vmul.f32 0.5, %v2149_v5 }
 0xcb5   :  { %2471 = vtanh.f32 %v2150_v42 }
 0xcbf   :  { %v2472_v37 = vpop.eup %2471 }
 0xcc0   :  { %v2152_v2 = vadd.f32 1.0, %v2472_v37 }
 0xcc2   :  { %v2153_v39 = vmul.f32 0.5, %v2152_v2 }
 0xcc4   :  { %2154 = vst [vmem:[#allocation11] sm:$0xff] %v2153_v39 }
 0xcc5   :  { %2572 = shalt.err (!%p2569_p11)
}
 0xcc6   :  { %s2573_s28 = scalar_lea.hbm %s3495_s11, 128 }
 0xcc7   :  { %p2574_p12 = scmp.ne.s32.totalorder %s3495_s11, %s2573_s28  ;;  %p2577_p13 = scmp.lt.u32.totalorder %s2573_s28, %s3495_s11 }
 0xcc9   :  { %p2579_p0 = pnand %p2577_p13, %p2574_p12 }
 0xccb   :  { %2582 = shalt.err (!%p2579_p0)
}
 0xccc   :  { %2164 = dma.vmem_to_hbm [thread:$0]  %s2162_s25, 128, %s3495_s11, [#allocation6]  }
 0xccd   :  { %2589 = dma.done.wait [#allocation6], 128  }
 0xcce   :  { %2590 = vsyncadd [#allocation6], 4294967168 }
 0xccf   :  { %2168 = vsyncpa [#allocation5], 1 }
 0xcd0   :  { %2169 = vsyncpa [#allocation9], 1 }
 0xcd1   :  { %2170 = vsyncpa [#allocation6], 1 }
 0xcd2   :  { %2171 = vsyncpa [#allocation7], 1 }

</bundles_post_ra>
